<compile_context>
chip_gen: v7x
topology: tpu7x:2x2x1
jax: 0.10.0
libtpu: 0.0.40
codegen_flags: <defaults>
</compile_context>

<pallas_src>
import functools

import jax
import jax.numpy as jnp
from jax.experimental import pallas as pl
from jax.experimental.pallas import tpu as pltpu


def _tabsra_fused_kernel(o_is_one,
                         x_ref, xrep_ref,
                         w1_ref, b1_ref,
                         w2q_ref, b2q_ref,
                         w2k_ref, b2k_ref,
                         s_ref,
                         wc_ref, bc_ref,
                         out_ref):
    x = x_ref[...]                                           # (TB, F) f32
    xb = x.astype(jnp.bfloat16)

    # Layer 1, all heads + Q/K fused along N: (TB, 2*n_head*H1)
    h1 = jnp.dot(xb, w1_ref[...], preferred_element_type=jnp.float32) + b1_ref[...]
    h1 = jnp.maximum(h1, 0.0)                                # ReLU (f32 VPU)
    h1b = h1.astype(jnp.bfloat16)

    # Layer 2 (head-block-diagonal).  The Q branch carries the dim_head**-0.5
    # scale (folded on the host), so no extra scaling multiply is needed.
    q = jnp.dot(h1b, w2q_ref[...], preferred_element_type=jnp.float32) + b2q_ref[...]
    k = jnp.dot(h1b, w2k_ref[...], preferred_element_type=jnp.float32) + b2k_ref[...]

    # Per-feature <q_j, k_j> via the 0/1 summation matrix -> (TB, n_head*F)
    prod = (q * k).astype(jnp.bfloat16)
    score = jnp.dot(prod, s_ref[...], preferred_element_type=jnp.float32)
    att = jax.nn.sigmoid(score)                              # f32 (EUP)

    out_rep = att * xrep_ref[...]                            # (TB, n_head*F) f32

    if o_is_one:
        # dim_output == 1: VPU multiply + lane reduction, not an N=1 MXU matmul.
        logit = jnp.sum(out_rep * wc_ref[...], axis=-1, keepdims=True) + bc_ref[...]
    else:
        logit = jnp.dot(out_rep.astype(jnp.bfloat16), wc_ref[...],
                        preferred_element_type=jnp.float32) + bc_ref[...]
    out_ref[...] = logit                                     # single write per tile


def _block_diag(blocks):
    n = len(blocks)
    r, c = blocks[0].shape
    out = jnp.zeros((n * r, n * c), blocks[0].dtype)
    for i, b in enumerate(blocks):
        out = out.at[i * r:(i + 1) * r, i * c:(i + 1) * c].set(b)
    return out


def tabsra_forward(x, params, *, dim_head, tile_b=128):
    """params: dict of stacked per-head parameters (leading axis = n_head)."""
    B, F = x.shape
    n_head, _, H1 = params["wk1"].shape
    H2 = params["wk2"].shape[-1]                 # = F * dim_head
    O = params["wc"].shape[-1]
    scale = float(dim_head) ** (-0.5)

    # ---------- host-side weight packing (tiny, runs once in XLA) ----------
    # Layer-1 column order: [q_h0 | q_h1 | ... | k_h0 | k_h1 | ...]
    w1 = jnp.concatenate([params["wq1"][h] for h in range(n_head)]
                         + [params["wk1"][h] for h in range(n_head)], axis=1)
    b1 = jnp.concatenate([params["bq1"][h] for h in range(n_head)]
                         + [params["bk1"][h] for h in range(n_head)], axis=1)
    # Layer 2: (2*n_head*H1, n_head*H2), block-diagonal per head; scale on Q.
    zeros_half = jnp.zeros((n_head * H1, n_head * H2), jnp.float32)
    w2q = jnp.concatenate(
        [_block_diag([params["wq2"][h] for h in range(n_head)]) * scale, zeros_half],
        axis=0)
    w2k = jnp.concatenate(
        [zeros_half, _block_diag([params["wk2"][h] for h in range(n_head)])],
        axis=0)
    b2q = jnp.concatenate([params["bq2"][h] for h in range(n_head)], axis=1) * scale
    b2k = jnp.concatenate([params["bk2"][h] for h in range(n_head)], axis=1)
    # Summation matrix: per head, sums groups of dim_head contiguous columns.
    s_mat = jnp.kron(jnp.eye(n_head, dtype=jnp.float32),
                     jnp.repeat(jnp.eye(F, dtype=jnp.float32), dim_head, axis=0))
    # Classifier: stacking wc vertically sums the heads inside one contraction.
    o_is_one = (O == 1)
    if o_is_one:
        wc = jnp.concatenate([params["wc"][h] for h in range(n_head)],
                             axis=0).T.astype(jnp.float32)          # (1, n_head*F)
    else:
        wc = jnp.concatenate([params["wc"][h] for h in range(n_head)],
                             axis=0).astype(jnp.bfloat16)            # (n_head*F, O)
    bc = jnp.sum(params["bc"], axis=0)                               # (1, O)

    # bf16 MXU operands (f32 accumulation inside the kernel; biases stay f32).
    w1 = w1.astype(jnp.bfloat16)
    w2q = w2q.astype(jnp.bfloat16)
    w2k = w2k.astype(jnp.bfloat16)
    s_mat = s_mat.astype(jnp.bfloat16)                               # exact 0/1

    # ---------- batch tiling ----------
    B_pad = ((B + tile_b - 1) // tile_b) * tile_b
    x_p = jnp.pad(x, ((0, B_pad - B), (0, 0))) if B_pad != B else x
    x_rep = jnp.tile(x_p, (1, n_head))                               # (B_pad, n_head*F)

    H1T = 2 * n_head * H1
    H2T = n_head * H2
    FT = n_head * F

    def batch_spec(cols):
        return pl.BlockSpec((tile_b, cols), lambda i: (i, 0))

    def full_spec(shape):
        return pl.BlockSpec(shape, lambda i: (0, 0))

    in_specs = [
        batch_spec(F),               # x
        batch_spec(FT),              # x tiled per head
        full_spec((F, H1T)),         # w1
        full_spec((1, H1T)),         # b1
        full_spec((H1T, H2T)),       # w2q (scaled)
        full_spec((1, H2T)),         # b2q (scaled)
        full_spec((H1T, H2T)),       # w2k
        full_spec((1, H2T)),         # b2k
        full_spec((H2T, FT)),        # summation matrix
        full_spec(wc.shape),         # wc (packed)
        full_spec((1, O)),           # bc (summed over heads)
    ]

    flops = 2 * B_pad * (F * H1T + 2 * H1T * H2T + H2T * FT + FT * O)
    bytes_accessed = sum(int(a.size) * a.dtype.itemsize for a in
                         (x_p, x_rep, w1, b1, w2q, b2q, w2k, b2k, s_mat, wc, bc))
    bytes_accessed += B_pad * O * 4
    cost = pl.CostEstimate(flops=flops, transcendentals=B_pad * FT,
                           bytes_accessed=bytes_accessed)

    out = pl.pallas_call(
        functools.partial(_tabsra_fused_kernel, o_is_one),
        out_shape=jax.ShapeDtypeStruct((B_pad, O), jnp.float32),
        grid_spec=pltpu.PrefetchScalarGridSpec(
            num_scalar_prefetch=0,
            grid=(B_pad // tile_b,),
            in_specs=in_specs,
            out_specs=batch_spec(O),
        ),
        compiler_params=pltpu.CompilerParams(
            dimension_semantics=("parallel",)),
        cost_estimate=cost,
    )(x_p, x_rep, w1, b1, w2q, b2q, w2k, b2k, s_mat, wc, bc)

    out = out[:B]
    # torch: result.sum(axis=0).squeeze(-1)
    return jnp.squeeze(out, axis=-1) if o_is_one else out


def tabsra_reference(x, params, *, dim_head):
    """Pure-JAX f32 reference of the same forward pass (per-head, unfused)."""
    scale = float(dim_head) ** (-0.5)
    B, F = x.shape
    n_head = params["wk1"].shape[0]
    logits = []
    for h in range(n_head):
        def enc(w1, b1, w2, b2):
            h1 = jnp.maximum(x @ w1 + b1[0], 0.0)
            return h1 @ w2 + b2[0]
        k = enc(params["wk1"][h], params["bk1"][h], params["wk2"][h], params["bk2"][h])
        q = enc(params["wq1"][h], params["bq1"][h], params["wq2"][h], params["bq2"][h])
        score = (q * k).reshape(B, F, dim_head).sum(-1)
        att = jax.nn.sigmoid(score * scale)
        logits.append((att * x) @ params["wc"][h] + params["bc"][h][0])
    res = jnp.stack(logits).sum(0)
    return jnp.squeeze(res, -1) if res.shape[-1] == 1 else res


def init_params(key, *, dim_input, dim_head, n_head, dim_output, n_hidden_encoder=2):
    assert n_hidden_encoder == 2
    F, D = dim_input, dim_head
    H1, H2 = (F * D) // 2, F * D
    shapes = {
        "wk1": (n_head, F, H1), "bk1": (n_head, 1, H1),
        "wk2": (n_head, H1, H2), "bk2": (n_head, 1, H2),
        "wq1": (n_head, F, H1), "bq1": (n_head, 1, H1),
        "wq2": (n_head, H1, H2), "bq2": (n_head, 1, H2),
        "wc": (n_head, F, dim_output), "bc": (n_head, 1, dim_output),
    }
    fan_in = {"wk1": F, "bk1": F, "wk2": H1, "bk2": H1,
              "wq1": F, "bq1": F, "wq2": H1, "bq2": H1,
              "wc": F, "bc": F}
    params = {}
    keys = jax.random.split(key, len(shapes))
    for k_, (name, shp) in zip(keys, sorted(shapes.items())):
        bound = fan_in[name] ** (-0.5)   # PyTorch-style uniform(-1/sqrt(fan_in), ...)
        params[name] = jax.random.uniform(k_, shp, jnp.float32, -bound, bound)
    return params


if __name__ == "__main__":
    # Small, forward-consistent shapes (batch > tile to exercise the batch grid).
    B, dim_input, dim_head, n_head, dim_output = 200, 16, 8, 2, 1

    key = jax.random.PRNGKey(0)
    kx, kp = jax.random.split(key)
    x = jax.random.normal(kx, (B, dim_input), jnp.float32)
    params = init_params(kp, dim_input=dim_input, dim_head=dim_head,
                         n_head=n_head, dim_output=dim_output)

    out = tabsra_forward(x, params, dim_head=dim_head, tile_b=128)
    out = jax.block_until_ready(out)

    ref = tabsra_reference(x, params, dim_head=dim_head)
    assert out.shape == (B,), out.shape
    # Tolerance accounts for bf16 matmul operands (f32 accumulation).
    assert jnp.allclose(out, ref, atol=5e-2, rtol=5e-2), (out, ref)

    print("KERNEL_OK")
</pallas_src>

<mosaic_0001>
module attributes {stable_mosaic.version = 11 : i64} {
  func.func @_tabsra_fused_kernel(%arg0: i32, %arg1: memref<128x16xf32, #tpu.memory_space<vmem>>, %arg2: memref<128x32xf32, #tpu.memory_space<vmem>>, %arg3: memref<16x256xbf16, #tpu.memory_space<vmem>>, %arg4: memref<1x256xf32, #tpu.memory_space<vmem>>, %arg5: memref<256x256xbf16, #tpu.memory_space<vmem>>, %arg6: memref<1x256xf32, #tpu.memory_space<vmem>>, %arg7: memref<256x256xbf16, #tpu.memory_space<vmem>>, %arg8: memref<1x256xf32, #tpu.memory_space<vmem>>, %arg9: memref<256x32xbf16, #tpu.memory_space<vmem>>, %arg10: memref<1x32xf32, #tpu.memory_space<vmem>>, %arg11: memref<1x1xf32, #tpu.memory_space<vmem>>, %arg12: memref<128x1xf32, #tpu.memory_space<vmem>>) attributes {dimension_semantics = [#tpu.dimension_semantics<parallel>], iteration_bounds = array<i64: 2>, scalar_prefetch = 0 : i64, scratch_operands = 0 : i64, tpu.core_type = #tpu.core_type<tc>, window_params = [{transform_indices = @transform_0, window_bounds = array<i64: 128, 16>}, {transform_indices = @transform_1, window_bounds = array<i64: 128, 32>}, {pipeline_mode = #tpu.pipeline_mode<synchronous>, transform_indices = @transform_2, window_bounds = array<i64: 16, 256>}, {pipeline_mode = #tpu.pipeline_mode<synchronous>, transform_indices = @transform_3, window_bounds = array<i64: 1, 256>}, {pipeline_mode = #tpu.pipeline_mode<synchronous>, transform_indices = @transform_4, window_bounds = array<i64: 256, 256>}, {pipeline_mode = #tpu.pipeline_mode<synchronous>, transform_indices = @transform_5, window_bounds = array<i64: 1, 256>}, {pipeline_mode = #tpu.pipeline_mode<synchronous>, transform_indices = @transform_6, window_bounds = array<i64: 256, 256>}, {pipeline_mode = #tpu.pipeline_mode<synchronous>, transform_indices = @transform_7, window_bounds = array<i64: 1, 256>}, {pipeline_mode = #tpu.pipeline_mode<synchronous>, transform_indices = @transform_8, window_bounds = array<i64: 256, 32>}, {pipeline_mode = #tpu.pipeline_mode<synchronous>, transform_indices = @transform_9, window_bounds = array<i64: 1, 32>}, {pipeline_mode = #tpu.pipeline_mode<synchronous>, transform_indices = @transform_10, window_bounds = array<i64: 1, 1>}, {transform_indices = @transform_11, window_bounds = array<i64: 128, 1>}]} {
    %c0 = arith.constant 0 : index
    %c0_0 = arith.constant 0 : index
    %0 = vector.load %arg1[%c0, %c0_0] : memref<128x16xf32, #tpu.memory_space<vmem>>, vector<128x16xf32>
    %1 = arith.truncf %0 : vector<128x16xf32> to vector<128x16xbf16>
    %c0_1 = arith.constant 0 : index
    %c0_2 = arith.constant 0 : index
    %2 = vector.load %arg3[%c0_1, %c0_2] : memref<16x256xbf16, #tpu.memory_space<vmem>>, vector<16x256xbf16>
    %cst = arith.constant dense<0.000000e+00> : vector<128x256xf32>
    %3 = tpu.matmul %1, %2, %cst {dimension_numbers = #tpu.dot_dimension_numbers<[1], [0], [0], [1], [0, 0, 1, 1], [], []>} : vector<128x16xbf16>, vector<16x256xbf16>, vector<128x256xf32> -> vector<128x256xf32>
    %c0_3 = arith.constant 0 : index
    %c0_4 = arith.constant 0 : index
    %4 = vector.load %arg4[%c0_3, %c0_4] : memref<1x256xf32, #tpu.memory_space<vmem>>, vector<1x256xf32>
    %5 = vector.broadcast %4 : vector<1x256xf32> to vector<128x256xf32>
    %6 = arith.addf %3, %5 : vector<128x256xf32>
    %cst_5 = arith.constant 0.000000e+00 : f32
    %7 = vector.broadcast %cst_5 : f32 to vector<128x256xf32>
    %8 = arith.maximumf %6, %7 : vector<128x256xf32>
    %9 = arith.truncf %8 : vector<128x256xf32> to vector<128x256xbf16>
    %c0_6 = arith.constant 0 : index
    %c0_7 = arith.constant 0 : index
    %10 = vector.load %arg5[%c0_6, %c0_7] : memref<256x256xbf16, #tpu.memory_space<vmem>>, vector<256x256xbf16>
    %cst_8 = arith.constant dense<0.000000e+00> : vector<128x256xf32>
    %11 = tpu.matmul %9, %10, %cst_8 {dimension_numbers = #tpu.dot_dimension_numbers<[1], [0], [0], [1], [0, 0, 1, 1], [], []>} : vector<128x256xbf16>, vector<256x256xbf16>, vector<128x256xf32> -> vector<128x256xf32>
    %c0_9 = arith.constant 0 : index
    %c0_10 = arith.constant 0 : index
    %12 = vector.load %arg6[%c0_9, %c0_10] : memref<1x256xf32, #tpu.memory_space<vmem>>, vector<1x256xf32>
    %13 = vector.broadcast %12 : vector<1x256xf32> to vector<128x256xf32>
    %14 = arith.addf %11, %13 : vector<128x256xf32>
    %c0_11 = arith.constant 0 : index
    %c0_12 = arith.constant 0 : index
    %15 = vector.load %arg7[%c0_11, %c0_12] : memref<256x256xbf16, #tpu.memory_space<vmem>>, vector<256x256xbf16>
    %cst_13 = arith.constant dense<0.000000e+00> : vector<128x256xf32>
    %16 = tpu.matmul %9, %15, %cst_13 {dimension_numbers = #tpu.dot_dimension_numbers<[1], [0], [0], [1], [0, 0, 1, 1], [], []>} : vector<128x256xbf16>, vector<256x256xbf16>, vector<128x256xf32> -> vector<128x256xf32>
    %c0_14 = arith.constant 0 : index
    %c0_15 = arith.constant 0 : index
    %17 = vector.load %arg8[%c0_14, %c0_15] : memref<1x256xf32, #tpu.memory_space<vmem>>, vector<1x256xf32>
    %18 = vector.broadcast %17 : vector<1x256xf32> to vector<128x256xf32>
    %19 = arith.addf %16, %18 : vector<128x256xf32>
    %20 = arith.mulf %14, %19 : vector<128x256xf32>
    %21 = arith.truncf %20 : vector<128x256xf32> to vector<128x256xbf16>
    %c0_16 = arith.constant 0 : index
    %c0_17 = arith.constant 0 : index
    %22 = vector.load %arg9[%c0_16, %c0_17] : memref<256x32xbf16, #tpu.memory_space<vmem>>, vector<256x32xbf16>
    %cst_18 = arith.constant dense<0.000000e+00> : vector<128x32xf32>
    %23 = tpu.matmul %21, %22, %cst_18 {dimension_numbers = #tpu.dot_dimension_numbers<[1], [0], [0], [1], [0, 0, 1, 1], [], []>} : vector<128x256xbf16>, vector<256x32xbf16>, vector<128x32xf32> -> vector<128x32xf32>
    %24 = arith.negf %23 : vector<128x32xf32>
    %25 = math.exp %24 : vector<128x32xf32>
    %cst_19 = arith.constant 1.000000e+00 : f32
    %26 = vector.broadcast %cst_19 : f32 to vector<128x32xf32>
    %27 = arith.addf %26, %25 : vector<128x32xf32>
    %28 = arith.divf %26, %27 : vector<128x32xf32>
    %c0_20 = arith.constant 0 : index
    %c0_21 = arith.constant 0 : index
    %29 = vector.load %arg2[%c0_20, %c0_21] : memref<128x32xf32, #tpu.memory_space<vmem>>, vector<128x32xf32>
    %30 = arith.mulf %28, %29 : vector<128x32xf32>
    %c0_22 = arith.constant 0 : index
    %c0_23 = arith.constant 0 : index
    %31 = vector.load %arg10[%c0_22, %c0_23] : memref<1x32xf32, #tpu.memory_space<vmem>>, vector<1x32xf32>
    %32 = vector.broadcast %31 : vector<1x32xf32> to vector<128x32xf32>
    %33 = arith.mulf %30, %32 : vector<128x32xf32>
    %cst_24 = arith.constant dense<0.000000e+00> : vector<128xf32>
    %34 = vector.multi_reduction <add>, %33, %cst_24 [1] : vector<128x32xf32> to vector<128xf32>
    %35 = vector.shape_cast %34 : vector<128xf32> to vector<128x1xf32>
    %c0_25 = arith.constant 0 : index
    %c0_26 = arith.constant 0 : index
    %36 = vector.load %arg11[%c0_25, %c0_26] : memref<1x1xf32, #tpu.memory_space<vmem>>, vector<1x1xf32>
    %37 = vector.broadcast %36 : vector<1x1xf32> to vector<128x1xf32>
    %38 = arith.addf %35, %37 : vector<128x1xf32>
    %c0_27 = arith.constant 0 : index
    %c0_28 = arith.constant 0 : index
    %39 = vector.load %arg12[%c0_27, %c0_28] : memref<128x1xf32, #tpu.memory_space<vmem>>, vector<128x1xf32>
    tpu.vector_store %arg12[%c0_27, %c0_28], %38 {strides = array<i32>} : memref<128x1xf32, #tpu.memory_space<vmem>>, vector<128x1xf32>,
    return
  }
  func.func @transform_0(%arg0: i32) -> (i32, i32) {
    %c0_i32 = arith.constant 0 : i32
    %c0_i32_0 = arith.constant 0 : i32
    return %arg0, %c0_i32 : i32, i32
  }
  func.func @transform_1(%arg0: i32) -> (i32, i32) {
    %c0_i32 = arith.constant 0 : i32
    %c0_i32_0 = arith.constant 0 : i32
    return %arg0, %c0_i32 : i32, i32
  }
  func.func @transform_2(%arg0: i32) -> (i32, i32) {
    %c0_i32 = arith.constant 0 : i32
    %c0_i32_0 = arith.constant 0 : i32
    %c0_i32_1 = arith.constant 0 : i32
    return %c0_i32, %c0_i32_0 : i32, i32
  }
  func.func @transform_3(%arg0: i32) -> (i32, i32) {
    %c0_i32 = arith.constant 0 : i32
    %c0_i32_0 = arith.constant 0 : i32
    %c0_i32_1 = arith.constant 0 : i32
    return %c0_i32, %c0_i32_0 : i32, i32
  }
  func.func @transform_4(%arg0: i32) -> (i32, i32) {
    %c0_i32 = arith.constant 0 : i32
    %c0_i32_0 = arith.constant 0 : i32
    %c0_i32_1 = arith.constant 0 : i32
    return %c0_i32, %c0_i32_0 : i32, i32
  }
  func.func @transform_5(%arg0: i32) -> (i32, i32) {
    %c0_i32 = arith.constant 0 : i32
    %c0_i32_0 = arith.constant 0 : i32
    %c0_i32_1 = arith.constant 0 : i32
    return %c0_i32, %c0_i32_0 : i32, i32
  }
  func.func @transform_6(%arg0: i32) -> (i32, i32) {
    %c0_i32 = arith.constant 0 : i32
    %c0_i32_0 = arith.constant 0 : i32
    %c0_i32_1 = arith.constant 0 : i32
    return %c0_i32, %c0_i32_0 : i32, i32
  }
  func.func @transform_7(%arg0: i32) -> (i32, i32) {
    %c0_i32 = arith.constant 0 : i32
    %c0_i32_0 = arith.constant 0 : i32
    %c0_i32_1 = arith.constant 0 : i32
    return %c0_i32, %c0_i32_0 : i32, i32
  }
  func.func @transform_8(%arg0: i32) -> (i32, i32) {
    %c0_i32 = arith.constant 0 : i32
    %c0_i32_0 = arith.constant 0 : i32
    %c0_i32_1 = arith.constant 0 : i32
    return %c0_i32, %c0_i32_0 : i32, i32
  }
  func.func @transform_9(%arg0: i32) -> (i32, i32) {
    %c0_i32 = arith.constant 0 : i32
    %c0_i32_0 = arith.constant 0 : i32
    %c0_i32_1 = arith.constant 0 : i32
    return %c0_i32, %c0_i32_0 : i32, i32
  }
  func.func @transform_10(%arg0: i32) -> (i32, i32) {
    %c0_i32 = arith.constant 0 : i32
    %c0_i32_0 = arith.constant 0 : i32
    %c0_i32_1 = arith.constant 0 : i32
    return %c0_i32, %c0_i32_0 : i32, i32
  }
  func.func @transform_11(%arg0: i32) -> (i32, i32) {
    %c0_i32 = arith.constant 0 : i32
    %c0_i32_0 = arith.constant 0 : i32
    return %arg0, %c0_i32 : i32, i32
  }
}

</mosaic_0001>

<bundles_post_ra>
// kernel: tpu_custom_call.1
= control target key start
LH: loop header
LB: loop body
LE: loop exit
PB: predicated region body
PF: predicated region fallthrough
CT: control target
= control target key end

     0   :  { %s2325_s19 = smov 0   ;;  %s2846_s0 = inlined_call_operand.vmem [shape: f32[256,16], index: 0, kind: input, shape index: {}]   ;;  %s2847_s1 = inlined_call_operand.vmem [shape: f32[256,32], index: 1, kind: input, shape index: {}]   ;;  %s2848_s2 = inlined_call_operand.vmem [shape: bf16[16,256], index: 2, kind: input, shape index: {}]   ;;  %s2849_s3 = inlined_call_operand.vmem [shape: f32[1,256], index: 3, kind: input, shape index: {}]   ;;  %s2850_s4 = inlined_call_operand.vmem [shape: bf16[256,256], index: 4, kind: input, shape index: {}]   ;;  %s2851_s5 = inlined_call_operand.vmem [shape: f32[1,256], index: 5, kind: input, shape index: {}]   ;;  %s2852_s6 = inlined_call_operand.vmem [shape: bf16[256,256], index: 6, kind: input, shape index: {}]   ;;  %s2853_s7 = inlined_call_operand.vmem [shape: f32[1,256], index: 7, kind: input, shape index: {}]   ;;  %s2854_s8 = inlined_call_operand.vmem [shape: bf16[256,32], index: 8, kind: input, shape index: {}]   ;;  %s2855_s9 = inlined_call_operand.vmem [shape: f32[1,32], index: 9, kind: input, shape index: {}]   ;;  %s2856_s10 = inlined_call_operand.<no memory space> [shape: f32[1,1], index: 10, kind: input, shape index: {}]   ;;  %s2857_s11 = inlined_call_operand.vmem [shape: f32[256,1], index: 11, kind: output, shape index: {}]  }
   0x1   :  { %v16_v0 = vstv %s2856_s10 }
   0x2   :  { %17 = vst [vmem:[#allocation2] sm:$0x1] %v16_v0 }
   0x3 LB: > { %s1864_s20 = sadd.s32 4294967295, %s2259_s19   ;;  %p1868_p0 = scmp.ge.s32.totalorder %s2259_s19, 1  ;;  %s2259_s19 = sphi %s2325_s19, %s23_s19  }
   0x4   : > { %p351_p1 = scmp.lt.s32.totalorder %s2259_s19, 3 }
   0x6   : > { %p352_p2 = pnand %p1868_p0, %p351_p1 }
   0x7   : > { %v2074_v1 = vld [vmem:[%s2848_s2 + $0x4] ss:$8 sps:$4 sm:$0xff] (!%p352_p2)   ;;  %s1869_s10 = sshll.u32 (!%p352_p2), %s1864_s20, 4  ;;  %v2076_v2 = vld [vmem:[%s2848_s2] ss:$8 sps:$4 sm:$0xff] (!%p352_p2)   ;;  %v2261_v3 = vmov (!%p352_p2), 0  }
   0x8   : > { %355 = sbr.rel (%p352_p2) target bundleno = 914 (0x392), region = 64  ;;  %520 = vmatprep.mubr.bf16.mxu0 (!%p352_p2), %v2261_v3  ;;  %p397_p3 = scmp.lt.s32.totalorder (!%p352_p2), %s1869_s10, 31  ;;  %488 = vmatprep.subr.bf16.mxu0 (!%p352_p2), %v2074_v1  ;;  %v2079_v4 = vld [vmem:[%s2852_s6 + $0x4] ss:$8 sps:$4 sm:$0xff] (!%p352_p2)   ;;  %v2082_v6 = vld [vmem:[%s2850_s4] ss:$8 sps:$4 sm:$0xff] (!%p352_p2)  }
   0x9   : > { %489 = vmatpush1.bf16.msra.mxu0 (!%p352_p2), %v2076_v2  ;;  %v2080_v5 = vld [vmem:[%s2850_s4 + $0x4] ss:$8 sps:$4 sm:$0xff] (!%p352_p2)   ;;  %v2086_v7 = vld [vmem:[%s2850_s4 + $0x14] ss:$8 sps:$4 sm:$0xff] (!%p352_p2)   ;;  %v2088_v8 = vld [vmem:[%s2850_s4 + $0x10] ss:$8 sps:$4 sm:$0xff] (!%p352_p2)  }
   0xa   : > { %1170 = vmatprep.subr.bf16.mxu0 (!%p352_p2), %v2079_v4  ;;  %853 = vmatprep.subr.bf16.mxu1 (!%p352_p2), %v2080_v5  ;;  %vm463_vm0 = vcmask (!%p352_p2), 130048   ;;  %v2077_v11 = vld [vmem:[%s2852_s6] ss:$8 sps:$4 sm:$0xff] (!%p352_p2)   ;;  %v2085_v13 = vld [vmem:[%s2852_s6 + $0x14] ss:$8 sps:$4 sm:$0xff] (!%p352_p2)   ;;  %vm1707_vm1 = vcmask (!%p352_p2), 261120  }
   0xb   : > { %854 = vmatpush1.bf16.msra.mxu1 (!%p352_p2), %v2082_v6  ;;  %v2083_v16 = vld [vmem:[%s2852_s6 + $0x10] ss:$8 sps:$4 sm:$0xff] (!%p352_p2)   ;;  %v2091_v17 = vld [vmem:[%s2852_s6 + $0x24] ss:$8 sps:$4 sm:$0xff] (!%p352_p2)   ;;  %v2094_v20 = vld [vmem:[%s2850_s4 + $0x20] ss:$8 sps:$4 sm:$0xff] (!%p352_p2)  }
   0xc   : > { %855 = vmatprep.subr.bf16.mxu1 (!%p352_p2), %v2086_v7  ;;  %v2092_v19 = vld [vmem:[%s2850_s4 + $0x24] ss:$8 sps:$4 sm:$0xff] (!%p352_p2)   ;;  %v2089_v21 = vld [vmem:[%s2852_s6 + $0x20] ss:$8 sps:$4 sm:$0xff] (!%p352_p2)   ;;  %v2097_v22 = vld [vmem:[%s2852_s6 + $0x34] ss:$8 sps:$4 sm:$0xff] (!%p352_p2)  }
   0xd   : > { %v2098_v23 = vld [vmem:[%s2850_s4 + $0x34] ss:$8 sps:$4 sm:$0xff] (!%p352_p2)   ;;  %v2100_v24 = vld [vmem:[%s2850_s4 + $0x30] ss:$8 sps:$4 sm:$0xff] (!%p352_p2)   ;;  %v2104_v28 = vld [vmem:[%s2850_s4 + $0x44] ss:$8 sps:$4 sm:$0xff] (!%p352_p2)  }
   0xe   : > { %v2095_v27 = vld [vmem:[%s2852_s6 + $0x30] ss:$8 sps:$4 sm:$0xff] (!%p352_p2)   ;;  %v2103_v29 = vld [vmem:[%s2852_s6 + $0x44] ss:$8 sps:$4 sm:$0xff] (!%p352_p2)   ;;  %v2106_v30 = vld [vmem:[%s2850_s4 + $0x40] ss:$8 sps:$4 sm:$0xff] (!%p352_p2)  }
   0xf   : > { %s2859_s10 = smov (!%p397_p3, %s1869_s10), 31  ;;  %856 = vmatpush1.bf16.msra.mxu1 %v2088_v8  ;;  %v2110_v32 = vld [vmem:[%s2850_s4 + $0x54] ss:$8 sps:$4 sm:$0xff]   ;;  %v2101_v33 = vld [vmem:[%s2852_s6 + $0x40] ss:$8 sps:$4 sm:$0xff]   ;;  %vm1779_vm2 = vcmask 7168  }
  0x10   : > { %s2349_s12 = sshll.u32 %s2859_s10, 3  ;;  %857 = vmatprep.subr.bf16.mxu1 %v2092_v19  ;;  %v2109_v34 = vld [vmem:[%s2852_s6 + $0x54] ss:$8 sps:$4 sm:$0xff]   ;;  %v2112_v35 = vld [vmem:[%s2850_s4 + $0x50] ss:$8 sps:$4 sm:$0xff]  }
  0x11   : > { %s2355_s15 = scalar_lea.vmem %s2846_s0, %s2349_s12  ;;  %v2116_v37 = vld [vmem:[%s2850_s4 + $0x64] ss:$8 sps:$4 sm:$0xff]   ;;  %v2107_v39 = vld [vmem:[%s2852_s6 + $0x50] ss:$8 sps:$4 sm:$0xff]   ;;  %v2118_v41 = vld [vmem:[%s2850_s4 + $0x60] ss:$8 sps:$4 sm:$0xff]   ;;  %s2809_s26 = scalar_lea.vmem %s2857_s11, %s2349_s12 }
  0x12   : > { %v415_v9 = vld [vmem:[%s2355_s15] sm:$0xff]  ;;  %v416_v10 = vld [vmem:[%s2355_s15 + $0x8] sm:$0xff]  ;;  %v417_v14 = vld [vmem:[%s2355_s15 + $0x10] sm:$0xff] }
  0x13   : > { %v431_v12 = vpack.c.bf16 %v416_v10, %v415_v9  ;;  %v418_v15 = vld [vmem:[%s2355_s15 + $0x18] sm:$0xff]  ;;  %858 = vmatpush1.bf16.msra.mxu1 %v2094_v20  ;;  %v419_v25 = vld [vmem:[%s2355_s15 + $0x20] sm:$0xff]  ;;  %v420_v26 = vld [vmem:[%s2355_s15 + $0x28] sm:$0xff] }
  0x14   : > { %v432_v18 = vpack.c.bf16 %v418_v15, %v417_v14  ;;  %859 = vmatprep.subr.bf16.mxu1 %v2098_v23  ;;  %v433_v31 = vpack.c.bf16 %v420_v26, %v419_v25  ;;  %v421_v36 = vld [vmem:[%s2355_s15 + $0x30] sm:$0xff]  ;;  %v422_v38 = vld [vmem:[%s2355_s15 + $0x38] sm:$0xff]  ;;  %v2115_v40 = vld [vmem:[%s2852_s6 + $0x64] ss:$8 sps:$4 sm:$0xff]  }
  0x15   : > { %1877 = vmatmul.mubr.msk.bf16.vlgmr.msra.gmra.mrb[0].mxu0 %vm463_vm0, %v431_v12  ;;  %v434_v42 = vpack.c.bf16 %v422_v38, %v421_v36  ;;  %v2122_v43 = vld [vmem:[%s2850_s4 + $0x74] ss:$8 sps:$4 sm:$0xff]   ;;  %v2113_v44 = vld [vmem:[%s2852_s6 + $0x60] ss:$8 sps:$4 sm:$0xff]   ;;  %v2124_v46 = vld [vmem:[%s2850_s4 + $0x70] ss:$8 sps:$4 sm:$0xff]  }
  0x16   : > { %530 = vmatprep.mubr.bf16.mxu0 %v2261_v3  ;;  %1171 = vmatpush1.bf16.msra.mxu0 %v2077_v11  ;;  %v2121_v45 = vld [vmem:[%s2852_s6 + $0x74] ss:$8 sps:$4 sm:$0xff]   ;;  %v423_v47 = vld [vmem:[%s2355_s15 + $0x40] sm:$0xff]  ;;  %v424_v49 = vld [vmem:[%s2355_s15 + $0x48] sm:$0xff] }
  0x17   : > { %1172 = vmatprep.subr.bf16.mxu0 %v2085_v13  ;;  %860 = vmatpush1.bf16.msra.mxu1 %v2100_v24  ;;  %v2128_v48 = vld [vmem:[%s2850_s4 + $0x84] ss:$8 sps:$4 sm:$0xff]   ;;  %v2119_v50 = vld [vmem:[%s2852_s6 + $0x70] ss:$8 sps:$4 sm:$0xff]   ;;  %v2130_v52 = vld [vmem:[%s2850_s4 + $0x80] ss:$8 sps:$4 sm:$0xff]   ;;  %v435_v53 = vpack.c.bf16 %v424_v49, %v423_v47 }
  0x18   : > { %861 = vmatprep.subr.bf16.mxu1 %v2104_v28  ;;  %v2127_v51 = vld [vmem:[%s2852_s6 + $0x84] ss:$8 sps:$4 sm:$0xff]   ;;  %v2134_v54 = vld [vmem:[%s2850_s4 + $0x94] ss:$8 sps:$4 sm:$0xff]   ;;  %v2125_v55 = vld [vmem:[%s2852_s6 + $0x80] ss:$8 sps:$4 sm:$0xff]  }
  0x19   : > { %v2133_v56 = vld [vmem:[%s2852_s6 + $0x94] ss:$8 sps:$4 sm:$0xff]   ;;  %v2136_v59 = vld [vmem:[%s2850_s4 + $0x90] ss:$8 sps:$4 sm:$0xff]   ;;  %v2140_v61 = vld [vmem:[%s2850_s4 + $0xa4] ss:$8 sps:$4 sm:$0xff]  }
  0x1a   : > { %1173 = vmatpush1.bf16.msra.mxu0 %v2083_v16  ;;  %v425_v57 = vld [vmem:[%s2355_s15 + $0x50] sm:$0xff]  ;;  %v426_v58 = vld [vmem:[%s2355_s15 + $0x58] sm:$0xff]  ;;  %v2139_v62 = vld [vmem:[%s2852_s6 + $0xa4] ss:$8 sps:$4 sm:$0xff]  }
  0x1b   : > { %1174 = vmatprep.subr.bf16.mxu0 %v2091_v17  ;;  %862 = vmatpush1.bf16.msra.mxu1 %v2106_v30  ;;  %v2131_v60 = vld [vmem:[%s2852_s6 + $0x90] ss:$8 sps:$4 sm:$0xff]   ;;  %v2142_v63 = vld [vmem:[%s2850_s4 + $0xa0] ss:$8 sps:$4 sm:$0xff]   ;;  %v2146_v0 = vld [vmem:[%s2850_s4 + $0xb4] ss:$8 sps:$4 sm:$0xff]   ;;  %v436_v2 = vpack.c.bf16 %v426_v58, %v425_v57 }
  0x1c   : > { %863 = vmatprep.subr.bf16.mxu1 %v2110_v32  ;;  %v2137_v1 = vld [vmem:[%s2852_s6 + $0xa0] ss:$8 sps:$4 sm:$0xff]   ;;  %v2145_v4 = vld [vmem:[%s2852_s6 + $0xb4] ss:$8 sps:$4 sm:$0xff]   ;;  %v2148_v5 = vld [vmem:[%s2850_s4 + $0xb0] ss:$8 sps:$4 sm:$0xff]  }
  0x1d   : > { %1878 = vmatmul.mubr.msk.bf16.gmra.mrb[4].mxu0 %vm463_vm0, %v432_v18  ;;  %v2152_v6 = vld [vmem:[%s2850_s4 + $0xc4] ss:$8 sps:$4 sm:$0xff]   ;;  %v2143_v9 = vld [vmem:[%s2852_s6 + $0xb0] ss:$8 sps:$4 sm:$0xff]   ;;  %v2154_v11 = vld [vmem:[%s2850_s4 + $0xc0] ss:$8 sps:$4 sm:$0xff]  }
  0x1e   : > { %540 = vmatprep.mubr.bf16.mxu0 %v2261_v3  ;;  %1175 = vmatpush1.bf16.msra.mxu0 %v2089_v21  ;;  %v427_v7 = vld [vmem:[%s2355_s15 + $0x60] sm:$0xff]  ;;  %v428_v8 = vld [vmem:[%s2355_s15 + $0x68] sm:$0xff]  ;;  %v2158_v12 = vld [vmem:[%s2850_s4 + $0xd4] ss:$8 sps:$4 sm:$0xff]  }
  0x1f   : > { %1176 = vmatprep.subr.bf16.mxu0 %v2097_v22  ;;  %864 = vmatpush1.bf16.msra.mxu1 %v2112_v35  ;;  %v2151_v10 = vld [vmem:[%s2852_s6 + $0xc4] ss:$8 sps:$4 sm:$0xff]   ;;  %v2149_v13 = vld [vmem:[%s2852_s6 + $0xc0] ss:$8 sps:$4 sm:$0xff]   ;;  %v437_v14 = vpack.c.bf16 %v428_v8, %v427_v7  ;;  %v2157_v15 = vld [vmem:[%s2852_s6 + $0xd4] ss:$8 sps:$4 sm:$0xff]  }
  0x20   : > { %865 = vmatprep.subr.bf16.mxu1 %v2116_v37  ;;  %v429_v16 = vld [vmem:[%s2355_s15 + $0x70] sm:$0xff]  ;;  %v430_v17 = vld [vmem:[%s2355_s15 + $0x78] sm:$0xff]  ;;  %v2164_v21 = vld [vmem:[%s2850_s4 + $0xe4] ss:$8 sps:$4 sm:$0xff]   ;;  %s2750_s15 = scalar_lea.vmem %s2847_s1, %s2349_s12 }
  0x21   : > { %v2155_v18 = vld [vmem:[%s2852_s6 + $0xd0] ss:$8 sps:$4 sm:$0xff]   ;;  %v438_v19 = vpack.c.bf16 %v430_v17, %v429_v16  ;;  %v2161_v22 = vld [vmem:[%s2852_s6 + $0xe0] ss:$8 sps:$4 sm:$0xff]   ;;  %v2169_v24 = vld [vmem:[%s2852_s6 + $0xf4] ss:$8 sps:$4 sm:$0xff]  }
  0x22   : > { %1177 = vmatpush1.bf16.msra.mxu0 %v2095_v27  ;;  %v2160_v20 = vld [vmem:[%s2850_s4 + $0xd0] ss:$8 sps:$4 sm:$0xff]   ;;  %v2166_v23 = vld [vmem:[%s2850_s4 + $0xe0] ss:$8 sps:$4 sm:$0xff]   ;;  %v2170_v25 = vld [vmem:[%s2850_s4 + $0xf4] ss:$8 sps:$4 sm:$0xff]  }
  0x23   : > { %1178 = vmatprep.subr.bf16.mxu0 %v2103_v29  ;;  %866 = vmatpush1.bf16.msra.mxu1 %v2118_v41  ;;  %v2167_v26 = vld [vmem:[%s2852_s6 + $0xf0] ss:$8 sps:$4 sm:$0xff]   ;;  %v2173_v28 = vld [vmem:[%s2854_s8 + $0x40] sm:$0xff]   ;;  %v443_v29 = vlaneseq }
  0x24   : > { %867 = vmatprep.subr.bf16.mxu1 %v2122_v43  ;;  %v2172_v27 = vld [vmem:[%s2850_s4 + $0xf0] ss:$8 sps:$4 sm:$0xff]   ;;  %v441_v32 = vld [vmem:[%s2849_s3] sm:$0x3] }
  0x25   : > { %1879 = vmatmul.mubr.msk.bf16.gmra.mrb[8].mxu0 %vm463_vm0, %v433_v31  ;;  %v444_v30 = vshrl.u32 %v443_v29, 7 }
  0x26   : > { %550 = vmatprep.mubr.bf16.mxu0 %v2261_v3  ;;  %1179 = vmatpush1.bf16.msra.mxu0 %v2101_v33 }
  0x27   : > { %1180 = vmatprep.subr.bf16.mxu0 %v2109_v34  ;;  %868 = vmatpush1.bf16.msra.mxu1 %v2124_v46  ;;  %v2574_v31 = vsub.s32 0, %v444_v30  ;;  %v2579_v33 = vsub.s32 1, %v444_v30 }
  0x28   : > { %869 = vmatprep.subr.bf16.mxu1 %v2128_v48 }
  0x29   : > { %v2582_v34 = vrot.slane %v441_v32, %v2574_v31  ;;  %v2585_v35 = vrot.slane %v441_v32, %v2579_v33 }
  0x2a   : > { %1181 = vmatpush1.bf16.msra.mxu0 %v2107_v39 }
  0x2b   : > { %1182 = vmatprep.subr.bf16.mxu0 %v2115_v40  ;;  %870 = vmatpush1.bf16.msra.mxu1 %v2130_v52 }
  0x2c   : > { %871 = vmatprep.subr.bf16.mxu1 %v2134_v54  ;;  %v2175_v54 = vld [vmem:[%s2854_s8 + $0x48] sm:$0xff]  }
  0x2d   : > { %1880 = vmatmul.mubr.msk.bf16.gmra.mrb[12].mxu0 %vm463_vm0, %v434_v42 }
  0x2e   : > { %560 = vmatprep.mubr.bf16.mxu0 %v2261_v3  ;;  %1183 = vmatpush1.bf16.msra.mxu0 %v2113_v44 }
  0x2f   : > { %1184 = vmatprep.subr.bf16.mxu0 %v2121_v45  ;;  %872 = vmatpush1.bf16.msra.mxu1 %v2136_v59 }
  0x30   : > { %873 = vmatprep.subr.bf16.mxu1 %v2140_v61 }
  0x32   : > { %1185 = vmatpush1.bf16.msra.mxu0 %v2119_v50 }
  0x33   : > { %1186 = vmatprep.subr.bf16.mxu0 %v2127_v51  ;;  %874 = vmatpush1.bf16.msra.mxu1 %v2142_v63  ;;  %v2174_v51 = vld [vmem:[%s2854_s8] sm:$0xff]   ;;  %v2177_v63 = vld [vmem:[%s2854_s8 + $0x50] sm:$0xff]  }
  0x34   : > { %875 = vmatprep.subr.bf16.mxu1 %v2146_v0 }
  0x35   : > { %1881 = vmatmul.mubr.msk.bf16.gmra.mrb[16].mxu0 %vm463_vm0, %v435_v53 }
  0x36   : > { %570 = vmatprep.mubr.bf16.mxu0 %v2261_v3  ;;  %1187 = vmatpush1.bf16.msra.mxu0 %v2125_v55 }
  0x37   : > { %1188 = vmatprep.subr.bf16.mxu0 %v2133_v56  ;;  %876 = vmatpush1.bf16.msra.mxu1 %v2148_v5 }
  0x38   : > { %877 = vmatprep.subr.bf16.mxu1 %v2152_v6  ;;  %v2178_v6 = vld [vmem:[%s2854_s8 + $0x10] sm:$0xff]  }
  0x3a   : > { %1189 = vmatpush1.bf16.msra.mxu0 %v2131_v60  ;;  %v2176_v60 = vld [vmem:[%s2854_s8 + $0x8] sm:$0xff]  }
  0x3b   : > { %1190 = vmatprep.subr.bf16.mxu0 %v2139_v62  ;;  %878 = vmatpush1.bf16.msra.mxu1 %v2154_v11 }
  0x3c   : > { %879 = vmatprep.subr.bf16.mxu1 %v2158_v12 }
  0x3d   : > { %1882 = vmatmul.mubr.msk.bf16.gmra.mrb[20].mxu0 %vm463_vm0, %v436_v2 }
  0x3e   : > { %580 = vmatprep.mubr.bf16.mxu0 %v2261_v3  ;;  %1191 = vmatpush1.bf16.msra.mxu0 %v2137_v1 }
  0x3f   : > { %1192 = vmatprep.subr.bf16.mxu0 %v2145_v4  ;;  %880 = vmatpush1.bf16.msra.mxu1 %v2160_v20 }
  0x40   : > { %881 = vmatprep.subr.bf16.mxu1 %v2164_v21 }
  0x42   : > { %1193 = vmatpush1.bf16.msra.mxu0 %v2143_v9  ;;  %v2179_v9 = vld [vmem:[%s2854_s8 + $0x58] sm:$0xff]  }
  0x43   : > { %1194 = vmatprep.subr.bf16.mxu0 %v2151_v10  ;;  %882 = vmatpush1.bf16.msra.mxu1 %v2166_v23  ;;  %v2182_v23 = vld [vmem:[%s2854_s8 + $0x20] sm:$0xff]  }
  0x44   : > { %883 = vmatprep.subr.bf16.mxu1 %v2170_v25 }
  0x45   : > { %1883 = vmatmul.mubr.msk.bf16.gmra.mrb[24].mxu0 %vm463_vm0, %v437_v14 }
  0x46   : > { %590 = vmatprep.mubr.bf16.mxu0 %v2261_v3  ;;  %1195 = vmatpush1.bf16.msra.mxu0 %v2149_v13  ;;  %v2163_v3 = vld [vmem:[%s2852_s6 + $0xe4] ss:$8 sps:$4 sm:$0xff]  }
  0x47   : > { %1196 = vmatprep.subr.bf16.mxu0 %v2157_v15  ;;  %884 = vmatpush1.bf16.msra.mxu1 %v2172_v27  ;;  %v2180_v15 = vld [vmem:[%s2854_s8 + $0x18] sm:$0xff]  }
  0x48   : > { %2049 = vmatprep.subr.bf16.mxu1 %v2173_v28 }
  0x4a   : > { %1197 = vmatpush1.bf16.msra.mxu0 %v2155_v18  ;;  %v2181_v18 = vld [vmem:[%s2854_s8 + $0x60] sm:$0xff]  }
  0x4b   : > { %1198 = vmatprep.subr.bf16.mxu0 %v2163_v3 }
  0x4d   : > { %1884 = vmatmul.mubr.msk.bf16.gmra.mrb[28].mxu0 %vm463_vm0, %v438_v19 }
  0x4e   : > { %1199 = vmatpush1.bf16.msra.mxu0 %v2161_v22 }
  0x4f   : > { %1200 = vmatprep.subr.bf16.mxu0 %v2169_v24 }
  0x52   : > { %1201 = vmatpush1.bf16.msra.mxu0 %v2167_v26  ;;  %v2183_v26 = vld [vmem:[%s2854_s8 + $0x68] sm:$0xff]  }
  0x53   : > { %1985 = vmatprep.subr.bf16.mxu0 %v2173_v28 }
  0xe8   : > { %v522_v36 = vpop.f32.mrb[0].mxu0 }
  0xe9   : > { %v523_v37 = vadd.f32 %v522_v36, %v2582_v34  ;;  %v524_v38 = vpop.f32.mrb[1].mxu0 }
  0xea   : > { %v525_v39 = vadd.f32 %v524_v38, %v2585_v35  ;;  %v526_v40 = vpop.f32.mrb[2].mxu0 }
  0xeb   : > { %v527_v41 = vadd.f32 %v526_v40, %v2582_v34  ;;  %v528_v42 = vpop.f32.mrb[3].mxu0  ;;  %v601_v44 = vmax.f32 %v523_v37, 0.0 }
  0xec   : > { %v529_v43 = vadd.f32 %v528_v42, %v2585_v35  ;;  %v602_v46 = vmax.f32 %v525_v39, 0.0 }
  0xed   : > { %v603_v45 = vmax.f32 %v527_v41, 0.0 }
  0xee   : > { %v604_v47 = vmax.f32 %v529_v43, 0.0 }
  0xef   : > { %v633_v48 = vpack.c.bf16 %v603_v45, %v601_v44 }
  0xf0   : > { %v532_v49 = vpop.f32.mrb[4].mxu0  ;;  %v634_v50 = vpack.c.bf16 %v604_v47, %v602_v46 }
  0xf1   : > { %v533_v52 = vadd.f32 %v532_v49, %v2582_v34  ;;  %v534_v53 = vpop.f32.mrb[5].mxu0 }
  0xf2   : > { %v535_v55 = vadd.f32 %v534_v53, %v2585_v35  ;;  %v536_v56 = vpop.f32.mrb[6].mxu0  ;;  %885 = vmatprep.mubr.bf16.mxu1 %v634_v50  ;;  %1202 = vmatprep.mubr.bf16.mxu0 %v634_v50 }
  0xf3   : > { %v537_v57 = vadd.f32 %v536_v56, %v2582_v34  ;;  %v538_v58 = vpop.f32.mrb[7].mxu0  ;;  %886 = vmatmul.mubr.bf16.vlgmr.msra.gmra.mrb[0].mxu1 %v633_v48  ;;  %1203 = vmatmul.mubr.bf16.vlgmr.msra.gmra.mrb[32].mxu0 %v633_v48  ;;  %v605_v61 = vmax.f32 %v533_v52, 0.0 }
  0xf4   : > { %v539_v59 = vadd.f32 %v538_v58, %v2585_v35  ;;  %1986 = vmatpush3.bf16.msra.mxu0 %v2174_v51  ;;  %2057 = vmatpush3.bf16.msra.mxu1 %v2174_v51  ;;  %v606_v0 = vmax.f32 %v535_v55, 0.0 }
  0xf5   : > { %v607_v62 = vmax.f32 %v537_v57, 0.0  ;;  %1987 = vmatprep.subr.bf16.mxu0 %v2175_v54  ;;  %2050 = vmatprep.subr.bf16.mxu1 %v2175_v54 }
  0xf6   : > { %v608_v1 = vmax.f32 %v539_v59, 0.0 }
  0xf7   : > { %v635_v2 = vpack.c.bf16 %v607_v62, %v605_v61 }
  0xf8   : > { %v636_v4 = vpack.c.bf16 %v608_v1, %v606_v0  ;;  %v542_v5 = vpop.f32.mrb[8].mxu0  ;;  %1988 = vmatpush3.bf16.msra.mxu0 %v2176_v60  ;;  %2058 = vmatpush3.bf16.msra.mxu1 %v2176_v60 }
  0xf9   : > { %v543_v7 = vadd.f32 %v542_v5, %v2582_v34  ;;  %v544_v8 = vpop.f32.mrb[9].mxu0  ;;  %1989 = vmatprep.subr.bf16.mxu0 %v2177_v63  ;;  %2051 = vmatprep.subr.bf16.mxu1 %v2177_v63 }
  0xfa   : > { %v545_v10 = vadd.f32 %v544_v8, %v2585_v35  ;;  %v546_v11 = vpop.f32.mrb[10].mxu0  ;;  %895 = vmatprep.mubr.bf16.mxu1 %v636_v4  ;;  %1212 = vmatprep.mubr.bf16.mxu0 %v636_v4 }
  0xfb   : > { %v547_v12 = vadd.f32 %v546_v11, %v2582_v34  ;;  %v548_v13 = vpop.f32.mrb[11].mxu0  ;;  %896 = vmatmul.mubr.bf16.gmra.mrb[4].mxu1 %v635_v2  ;;  %1213 = vmatmul.mubr.bf16.gmra.mrb[36].mxu0 %v635_v2  ;;  %v609_v16 = vmax.f32 %v543_v7, 0.0 }
  0xfc   : > { %v549_v14 = vadd.f32 %v548_v13, %v2585_v35  ;;  %1990 = vmatpush3.bf16.msra.mxu0 %v2178_v6  ;;  %2059 = vmatpush3.bf16.msra.mxu1 %v2178_v6  ;;  %v610_v19 = vmax.f32 %v545_v10, 0.0 }
  0xfd   : > { %v611_v17 = vmax.f32 %v547_v12, 0.0  ;;  %1991 = vmatprep.subr.bf16.mxu0 %v2179_v9  ;;  %2052 = vmatprep.subr.bf16.mxu1 %v2179_v9 }
  0xfe   : > { %v612_v20 = vmax.f32 %v549_v14, 0.0 }
  0xff   : > { %v637_v3 = vpack.c.bf16 %v611_v17, %v609_v16 }
 0x100   : > { %v638_v21 = vpack.c.bf16 %v612_v20, %v610_v19  ;;  %v552_v22 = vpop.f32.mrb[12].mxu0  ;;  %1992 = vmatpush3.bf16.msra.mxu0 %v2180_v15  ;;  %2060 = vmatpush3.bf16.msra.mxu1 %v2180_v15 }
 0x101   : > { %v553_v24 = vadd.f32 %v552_v22, %v2582_v34  ;;  %v554_v25 = vpop.f32.mrb[13].mxu0  ;;  %1993 = vmatprep.subr.bf16.mxu0 %v2181_v18  ;;  %2053 = vmatprep.subr.bf16.mxu1 %v2181_v18 }
 0x102   : > { %v555_v27 = vadd.f32 %v554_v25, %v2585_v35  ;;  %v556_v28 = vpop.f32.mrb[14].mxu0  ;;  %905 = vmatprep.mubr.bf16.mxu1 %v638_v21  ;;  %1222 = vmatprep.mubr.bf16.mxu0 %v638_v21 }
 0x103   : > { %v557_v29 = vadd.f32 %v556_v28, %v2582_v34  ;;  %v558_v30 = vpop.f32.mrb[15].mxu0  ;;  %906 = vmatmul.mubr.bf16.gmra.mrb[8].mxu1 %v637_v3  ;;  %1223 = vmatmul.mubr.bf16.gmra.mrb[40].mxu0 %v637_v3  ;;  %v613_v36 = vmax.f32 %v553_v24, 0.0 }
 0x104   : > { %v559_v32 = vadd.f32 %v558_v30, %v2585_v35  ;;  %1994 = vmatpush3.bf16.msra.mxu0 %v2182_v23  ;;  %2061 = vmatpush3.bf16.msra.mxu1 %v2182_v23  ;;  %v614_v38 = vmax.f32 %v555_v27, 0.0 }
 0x105   : > { %v615_v37 = vmax.f32 %v557_v29, 0.0  ;;  %1995 = vmatprep.subr.bf16.mxu0 %v2183_v26  ;;  %2054 = vmatprep.subr.bf16.mxu1 %v2183_v26 }
 0x106   : > { %v616_v39 = vmax.f32 %v559_v32, 0.0 }
 0x107   : > { %v639_v40 = vpack.c.bf16 %v615_v37, %v613_v36 }
 0x108   : > { %v640_v41 = vpack.c.bf16 %v616_v39, %v614_v38  ;;  %v562_v42 = vpop.f32.mrb[16].mxu0  ;;  %v2184_v38 = vld [vmem:[%s2854_s8 + $0x28] sm:$0xff]   ;;  %v2187_v39 = vld [vmem:[%s2854_s8 + $0x78] sm:$0xff]  }
 0x109   : > { %v563_v43 = vadd.f32 %v562_v42, %v2582_v34  ;;  %v564_v44 = vpop.f32.mrb[17].mxu0  ;;  %1996 = vmatpush3.bf16.msra.mxu0 %v2184_v38  ;;  %2062 = vmatpush3.bf16.msra.mxu1 %v2184_v38  ;;  %v998_v42 = vld [vmem:[%s2853_s7] sm:$0x3] }
 0x10a   : > { %v565_v45 = vadd.f32 %v564_v44, %v2585_v35  ;;  %v566_v46 = vpop.f32.mrb[18].mxu0  ;;  %915 = vmatprep.mubr.bf16.mxu1 %v640_v41  ;;  %1232 = vmatprep.mubr.bf16.mxu0 %v640_v41  ;;  %v681_v41 = vld [vmem:[%s2851_s5] sm:$0x3]  ;;  %v2674_v44 = vrot.slane %v998_v42, %v2574_v31 }
 0x10b   : > { %v567_v47 = vadd.f32 %v566_v46, %v2582_v34  ;;  %v568_v48 = vpop.f32.mrb[19].mxu0  ;;  %916 = vmatmul.mubr.bf16.gmra.mrb[12].mxu1 %v639_v40  ;;  %1233 = vmatmul.mubr.bf16.gmra.mrb[44].mxu0 %v639_v40  ;;  %v617_v50 = vmax.f32 %v563_v43, 0.0  ;;  %v2188_v40 = vld [vmem:[%s2854_s8 + $0x38] sm:$0xff]   ;;  %v2671_v43 = vrot.slane %v681_v41, %v2574_v31  ;;  %v2680_v46 = vrot.slane %v998_v42, %v2579_v33 }
 0x10c   : > { %v569_v49 = vadd.f32 %v568_v48, %v2585_v35  ;;  %v618_v52 = vmax.f32 %v565_v45, 0.0  ;;  %v2677_v45 = vrot.slane %v681_v41, %v2579_v33 }
 0x10d   : > { %v619_v51 = vmax.f32 %v567_v47, 0.0 }
 0x10e   : > { %v620_v53 = vmax.f32 %v569_v49, 0.0 }
 0x10f   : > { %v641_v54 = vpack.c.bf16 %v619_v51, %v617_v50 }
 0x110   : > { %v642_v55 = vpack.c.bf16 %v620_v53, %v618_v52  ;;  %v572_v56 = vpop.f32.mrb[20].mxu0 }
 0x111   : > { %v573_v57 = vadd.f32 %v572_v56, %v2582_v34  ;;  %v574_v58 = vpop.f32.mrb[21].mxu0 }
 0x112   : > { %v575_v59 = vadd.f32 %v574_v58, %v2585_v35  ;;  %v576_v60 = vpop.f32.mrb[22].mxu0  ;;  %925 = vmatprep.mubr.bf16.mxu1 %v642_v55  ;;  %1242 = vmatprep.mubr.bf16.mxu0 %v642_v55 }
 0x113   : > { %v577_v61 = vadd.f32 %v576_v60, %v2582_v34  ;;  %v578_v62 = vpop.f32.mrb[23].mxu0  ;;  %926 = vmatmul.mubr.bf16.gmra.mrb[16].mxu1 %v641_v54  ;;  %1243 = vmatmul.mubr.bf16.gmra.mrb[48].mxu0 %v641_v54  ;;  %v621_v0 = vmax.f32 %v573_v57, 0.0 }
 0x114   : > { %v579_v63 = vadd.f32 %v578_v62, %v2585_v35  ;;  %v622_v2 = vmax.f32 %v575_v59, 0.0 }
 0x115   : > { %v623_v1 = vmax.f32 %v577_v61, 0.0 }
 0x116   : > { %v624_v4 = vmax.f32 %v579_v63, 0.0 }
 0x117   : > { %v643_v5 = vpack.c.bf16 %v623_v1, %v621_v0 }
 0x118   : > { %v644_v6 = vpack.c.bf16 %v624_v4, %v622_v2  ;;  %v582_v7 = vpop.f32.mrb[24].mxu0 }
 0x119   : > { %v583_v8 = vadd.f32 %v582_v7, %v2582_v34  ;;  %v584_v9 = vpop.f32.mrb[25].mxu0 }
 0x11a   : > { %v585_v10 = vadd.f32 %v584_v9, %v2585_v35  ;;  %v586_v11 = vpop.f32.mrb[26].mxu0  ;;  %935 = vmatprep.mubr.bf16.mxu1 %v644_v6  ;;  %1252 = vmatprep.mubr.bf16.mxu0 %v644_v6 }
 0x11b   : > { %v587_v12 = vadd.f32 %v586_v11, %v2582_v34  ;;  %v588_v13 = vpop.f32.mrb[27].mxu0  ;;  %936 = vmatmul.mubr.bf16.gmra.mrb[20].mxu1 %v643_v5  ;;  %1253 = vmatmul.mubr.bf16.gmra.mrb[52].mxu0 %v643_v5  ;;  %v625_v15 = vmax.f32 %v583_v8, 0.0 }
 0x11c   : > { %v589_v14 = vadd.f32 %v588_v13, %v2585_v35  ;;  %v626_v17 = vmax.f32 %v585_v10, 0.0 }
 0x11d   : > { %v627_v16 = vmax.f32 %v587_v12, 0.0 }
 0x11e   : > { %v628_v18 = vmax.f32 %v589_v14, 0.0 }
 0x11f   : > { %v645_v19 = vpack.c.bf16 %v627_v16, %v625_v15 }
 0x120   : > { %v646_v20 = vpack.c.bf16 %v628_v18, %v626_v17  ;;  %v592_v3 = vpop.f32.mrb[28].mxu0 }
 0x121   : > { %v593_v21 = vadd.f32 %v592_v3, %v2582_v34  ;;  %v594_v22 = vpop.f32.mrb[29].mxu0 }
 0x122   : > { %v595_v23 = vadd.f32 %v594_v22, %v2585_v35  ;;  %v596_v24 = vpop.f32.mrb[30].mxu0  ;;  %945 = vmatprep.mubr.bf16.mxu1 %v646_v20  ;;  %1262 = vmatprep.mubr.bf16.mxu0 %v646_v20 }
 0x123   : > { %v597_v25 = vadd.f32 %v596_v24, %v2582_v34  ;;  %v598_v26 = vpop.f32.mrb[31].mxu0  ;;  %946 = vmatmul.mubr.bf16.gmra.mrb[24].mxu1 %v645_v19  ;;  %1263 = vmatmul.mubr.bf16.gmra.mrb[56].mxu0 %v645_v19  ;;  %v629_v28 = vmax.f32 %v593_v21, 0.0  ;;  %v2185_v34 = vld [vmem:[%s2854_s8 + $0x70] sm:$0xff]  }
 0x124   : > { %v599_v27 = vadd.f32 %v598_v26, %v2585_v35  ;;  %v630_v30 = vmax.f32 %v595_v23, 0.0  ;;  %v2186_v35 = vld [vmem:[%s2854_s8 + $0x30] sm:$0xff]   ;;  %1997 = vmatprep.subr.bf16.mxu0 %v2185_v34  ;;  %2055 = vmatprep.subr.bf16.mxu1 %v2185_v34 }
 0x125   : > { %v631_v29 = vmax.f32 %v597_v25, 0.0  ;;  %1998 = vmatpush3.bf16.msra.mxu0 %v2186_v35  ;;  %2063 = vmatpush3.bf16.msra.mxu1 %v2186_v35 }
 0x126   : > { %v632_v32 = vmax.f32 %v599_v27, 0.0  ;;  %1999 = vmatprep.subr.bf16.mxu0 %v2187_v39  ;;  %2056 = vmatprep.subr.bf16.mxu1 %v2187_v39 }
 0x127   : > { %v647_v36 = vpack.c.bf16 %v631_v29, %v629_v28 }
 0x128   : > { %v648_v37 = vpack.c.bf16 %v632_v32, %v630_v30 }
 0x129   : > { %2000 = vmatpush3.bf16.msra.mxu0 %v2188_v40  ;;  %2064 = vmatpush3.bf16.msra.mxu1 %v2188_v40 }
 0x12a   : > { %955 = vmatprep.mubr.bf16.mxu1 %v648_v37  ;;  %1272 = vmatprep.mubr.bf16.mxu0 %v648_v37 }
 0x12b   : > { %956 = vmatmul.mubr.bf16.gmra.mrb[28].mxu1 %v647_v36  ;;  %1273 = vmatmul.mubr.bf16.gmra.mrb[60].mxu0 %v647_v36 }
 0x1c6   : > { %v887_v47 = vpop.f32.mrb[0].mxu1  ;;  %v1204_v48 = vpop.f32.mrb[32].mxu0 }
 0x1c7   : > { %v888_v49 = vadd.f32 %v887_v47, %v2671_v43  ;;  %v1205_v50 = vadd.f32 %v1204_v48, %v2674_v44  ;;  %v889_v51 = vpop.f32.mrb[1].mxu1  ;;  %v1206_v52 = vpop.f32.mrb[33].mxu0 }
 0x1c8   : > { %v890_v53 = vadd.f32 %v889_v51, %v2677_v45  ;;  %v1207_v54 = vadd.f32 %v1206_v52, %v2680_v46  ;;  %v891_v31 = vpop.f32.mrb[2].mxu1  ;;  %v1208_v55 = vpop.f32.mrb[34].mxu0 }
 0x1c9   : > { %v1283_v56 = vmul.f32 %v1205_v50, %v888_v49  ;;  %v892_v57 = vadd.f32 %v891_v31, %v2671_v43  ;;  %v1209_v33 = vadd.f32 %v1208_v55, %v2674_v44  ;;  %v893_v58 = vpop.f32.mrb[3].mxu1  ;;  %v1210_v59 = vpop.f32.mrb[35].mxu0 }
 0x1ca   : > { %v1284_v60 = vmul.f32 %v1207_v54, %v890_v53  ;;  %v894_v61 = vadd.f32 %v893_v58, %v2677_v45  ;;  %v1211_v62 = vadd.f32 %v1210_v59, %v2680_v46 }
 0x1cb   : > { %v1285_v63 = vmul.f32 %v1209_v33, %v892_v57 }
 0x1cc   : > { %v1286_v0 = vmul.f32 %v1211_v62, %v894_v61 }
 0x1cd   : > { %v1315_v1 = vpack.c.bf16 %v1285_v63, %v1283_v56 }
 0x1ce   : > { %v897_v2 = vpop.f32.mrb[4].mxu1  ;;  %v1214_v4 = vpop.f32.mrb[36].mxu0  ;;  %v1316_v5 = vpack.c.bf16 %v1286_v0, %v1284_v60 }
 0x1cf   : > { %v898_v6 = vadd.f32 %v897_v2, %v2671_v43  ;;  %v1215_v7 = vadd.f32 %v1214_v4, %v2674_v44  ;;  %v899_v8 = vpop.f32.mrb[5].mxu1  ;;  %v1216_v9 = vpop.f32.mrb[37].mxu0 }
 0x1d0   : > { %v900_v10 = vadd.f32 %v899_v8, %v2677_v45  ;;  %v1217_v11 = vadd.f32 %v1216_v9, %v2680_v46  ;;  %v901_v12 = vpop.f32.mrb[6].mxu1  ;;  %v1218_v13 = vpop.f32.mrb[38].mxu0  ;;  %1491 = vmatprep.mubr.bf16.mxu0 %v1316_v5 }
 0x1d1   : > { %v1287_v14 = vmul.f32 %v1215_v7, %v898_v6  ;;  %v902_v15 = vadd.f32 %v901_v12, %v2671_v43  ;;  %v1219_v16 = vadd.f32 %v1218_v13, %v2674_v44  ;;  %v903_v17 = vpop.f32.mrb[7].mxu1  ;;  %v1220_v18 = vpop.f32.mrb[39].mxu0  ;;  %1492 = vmatmul.mubr.bf16.vlgmr.msra.gmra.mrb[64].mxu0 %v1315_v1 }
 0x1d2   : > { %v1288_v19 = vmul.f32 %v1217_v11, %v900_v10  ;;  %v904_v20 = vadd.f32 %v903_v17, %v2677_v45  ;;  %v1221_v3 = vadd.f32 %v1220_v18, %v2680_v46 }
 0x1d3   : > { %v1289_v21 = vmul.f32 %v1219_v16, %v902_v15 }
 0x1d4   : > { %v1290_v22 = vmul.f32 %v1221_v3, %v904_v20 }
 0x1d5   : > { %v1317_v23 = vpack.c.bf16 %v1289_v21, %v1287_v14 }
 0x1d6   : > { %v907_v24 = vpop.f32.mrb[8].mxu1  ;;  %v1224_v25 = vpop.f32.mrb[40].mxu0  ;;  %v1318_v26 = vpack.c.bf16 %v1290_v22, %v1288_v19 }
 0x1d7   : > { %v908_v27 = vadd.f32 %v907_v24, %v2671_v43  ;;  %v1225_v28 = vadd.f32 %v1224_v25, %v2674_v44  ;;  %v909_v29 = vpop.f32.mrb[9].mxu1  ;;  %v1226_v30 = vpop.f32.mrb[41].mxu0 }
 0x1d8   : > { %v910_v32 = vadd.f32 %v909_v29, %v2677_v45  ;;  %v1227_v36 = vadd.f32 %v1226_v30, %v2680_v46  ;;  %v911_v37 = vpop.f32.mrb[10].mxu1  ;;  %v1228_v38 = vpop.f32.mrb[42].mxu0  ;;  %1499 = vmatprep.mubr.bf16.mxu0 %v1318_v26 }
 0x1d9   : > { %v1291_v34 = vmul.f32 %v1225_v28, %v908_v27  ;;  %v912_v35 = vadd.f32 %v911_v37, %v2671_v43  ;;  %v1229_v39 = vadd.f32 %v1228_v38, %v2674_v44  ;;  %v913_v40 = vpop.f32.mrb[11].mxu1  ;;  %v1230_v41 = vpop.f32.mrb[43].mxu0  ;;  %1500 = vmatmul.mubr.bf16.gmra.mrb[68].mxu0 %v1317_v23 }
 0x1da   : > { %v1292_v42 = vmul.f32 %v1227_v36, %v910_v32  ;;  %v914_v47 = vadd.f32 %v913_v40, %v2677_v45  ;;  %v1231_v48 = vadd.f32 %v1230_v41, %v2680_v46 }
 0x1db   : > { %v1293_v49 = vmul.f32 %v1229_v39, %v912_v35 }
 0x1dc   : > { %v1294_v50 = vmul.f32 %v1231_v48, %v914_v47 }
 0x1dd   : > { %v1319_v51 = vpack.c.bf16 %v1293_v49, %v1291_v34 }
 0x1de   : > { %v917_v52 = vpop.f32.mrb[12].mxu1  ;;  %v1234_v53 = vpop.f32.mrb[44].mxu0  ;;  %v1320_v54 = vpack.c.bf16 %v1294_v50, %v1292_v42 }
 0x1df   : > { %v918_v31 = vadd.f32 %v917_v52, %v2671_v43  ;;  %v1235_v55 = vadd.f32 %v1234_v53, %v2674_v44  ;;  %v919_v56 = vpop.f32.mrb[13].mxu1  ;;  %v1236_v57 = vpop.f32.mrb[45].mxu0 }
 0x1e0   : > { %v920_v33 = vadd.f32 %v919_v56, %v2677_v45  ;;  %v1237_v58 = vadd.f32 %v1236_v57, %v2680_v46  ;;  %v921_v59 = vpop.f32.mrb[14].mxu1  ;;  %v1238_v60 = vpop.f32.mrb[46].mxu0  ;;  %1507 = vmatprep.mubr.bf16.mxu0 %v1320_v54 }
 0x1e1   : > { %v1295_v61 = vmul.f32 %v1235_v55, %v918_v31  ;;  %v922_v62 = vadd.f32 %v921_v59, %v2671_v43  ;;  %v1239_v63 = vadd.f32 %v1238_v60, %v2674_v44  ;;  %v923_v0 = vpop.f32.mrb[15].mxu1  ;;  %v1240_v1 = vpop.f32.mrb[47].mxu0  ;;  %1508 = vmatmul.mubr.bf16.gmra.mrb[72].mxu0 %v1319_v51 }
 0x1e2   : > { %v1296_v2 = vmul.f32 %v1237_v58, %v920_v33  ;;  %v924_v4 = vadd.f32 %v923_v0, %v2677_v45  ;;  %v1241_v5 = vadd.f32 %v1240_v1, %v2680_v46 }
 0x1e3   : > { %v1297_v6 = vmul.f32 %v1239_v63, %v922_v62 }
 0x1e4   : > { %v1298_v7 = vmul.f32 %v1241_v5, %v924_v4 }
 0x1e5   : > { %v1321_v8 = vpack.c.bf16 %v1297_v6, %v1295_v61 }
 0x1e6   : > { %v927_v9 = vpop.f32.mrb[16].mxu1  ;;  %v1244_v10 = vpop.f32.mrb[48].mxu0  ;;  %v1322_v11 = vpack.c.bf16 %v1298_v7, %v1296_v2 }
 0x1e7   : > { %v928_v12 = vadd.f32 %v927_v9, %v2671_v43  ;;  %v1245_v13 = vadd.f32 %v1244_v10, %v2674_v44  ;;  %v929_v14 = vpop.f32.mrb[17].mxu1  ;;  %v1246_v15 = vpop.f32.mrb[49].mxu0 }
 0x1e8   : > { %v930_v16 = vadd.f32 %v929_v14, %v2677_v45  ;;  %v1247_v17 = vadd.f32 %v1246_v15, %v2680_v46  ;;  %v931_v18 = vpop.f32.mrb[18].mxu1  ;;  %v1248_v19 = vpop.f32.mrb[50].mxu0  ;;  %1515 = vmatprep.mubr.bf16.mxu1 %v1322_v11 }
 0x1e9   : > { %v1299_v20 = vmul.f32 %v1245_v13, %v928_v12  ;;  %v932_v3 = vadd.f32 %v931_v18, %v2671_v43  ;;  %v1249_v21 = vadd.f32 %v1248_v19, %v2674_v44  ;;  %v933_v22 = vpop.f32.mrb[19].mxu1  ;;  %v1250_v23 = vpop.f32.mrb[51].mxu0  ;;  %1516 = vmatmul.mubr.bf16.vlgmr.msra.gmra.mrb[32].mxu1 %v1321_v8 }
 0x1ea   : > { %v1300_v24 = vmul.f32 %v1247_v17, %v930_v16  ;;  %v934_v25 = vadd.f32 %v933_v22, %v2677_v45  ;;  %v1251_v26 = vadd.f32 %v1250_v23, %v2680_v46 }
 0x1eb   : > { %v1301_v27 = vmul.f32 %v1249_v21, %v932_v3 }
 0x1ec   : > { %v1302_v28 = vmul.f32 %v1251_v26, %v934_v25 }
 0x1ed   : > { %v1323_v29 = vpack.c.bf16 %v1301_v27, %v1299_v20 }
 0x1ee   : > { %v937_v30 = vpop.f32.mrb[20].mxu1  ;;  %v1254_v32 = vpop.f32.mrb[52].mxu0  ;;  %v1324_v36 = vpack.c.bf16 %v1302_v28, %v1300_v24 }
 0x1ef   : > { %v938_v37 = vadd.f32 %v937_v30, %v2671_v43  ;;  %v1255_v38 = vadd.f32 %v1254_v32, %v2674_v44  ;;  %v939_v34 = vpop.f32.mrb[21].mxu1  ;;  %v1256_v35 = vpop.f32.mrb[53].mxu0 }
 0x1f0   : > { %v940_v39 = vadd.f32 %v939_v34, %v2677_v45  ;;  %v1257_v40 = vadd.f32 %v1256_v35, %v2680_v46  ;;  %v941_v41 = vpop.f32.mrb[22].mxu1  ;;  %v1258_v42 = vpop.f32.mrb[54].mxu0  ;;  %1523 = vmatprep.mubr.bf16.mxu1 %v1324_v36 }
 0x1f1   : > { %v1303_v47 = vmul.f32 %v1255_v38, %v938_v37  ;;  %v942_v48 = vadd.f32 %v941_v41, %v2671_v43  ;;  %v1259_v49 = vadd.f32 %v1258_v42, %v2674_v44  ;;  %v943_v50 = vpop.f32.mrb[23].mxu1  ;;  %v1260_v51 = vpop.f32.mrb[55].mxu0  ;;  %1524 = vmatmul.mubr.bf16.gmra.mrb[36].mxu1 %v1323_v29 }
 0x1f2   : > { %v1304_v52 = vmul.f32 %v1257_v40, %v940_v39  ;;  %v944_v53 = vadd.f32 %v943_v50, %v2677_v45  ;;  %v1261_v54 = vadd.f32 %v1260_v51, %v2680_v46 }
 0x1f3   : > { %v1305_v31 = vmul.f32 %v1259_v49, %v942_v48 }
 0x1f4   : > { %v1306_v55 = vmul.f32 %v1261_v54, %v944_v53 }
 0x1f5   : > { %v1325_v56 = vpack.c.bf16 %v1305_v31, %v1303_v47 }
 0x1f6   : > { %v947_v57 = vpop.f32.mrb[24].mxu1  ;;  %v1264_v33 = vpop.f32.mrb[56].mxu0  ;;  %v1326_v58 = vpack.c.bf16 %v1306_v55, %v1304_v52 }
 0x1f7   : > { %v948_v59 = vadd.f32 %v947_v57, %v2671_v43  ;;  %v1265_v60 = vadd.f32 %v1264_v33, %v2674_v44  ;;  %v949_v61 = vpop.f32.mrb[25].mxu1  ;;  %v1266_v62 = vpop.f32.mrb[57].mxu0 }
 0x1f8   : > { %v950_v63 = vadd.f32 %v949_v61, %v2677_v45  ;;  %v1267_v0 = vadd.f32 %v1266_v62, %v2680_v46  ;;  %v951_v1 = vpop.f32.mrb[26].mxu1  ;;  %v1268_v2 = vpop.f32.mrb[58].mxu0  ;;  %1531 = vmatprep.mubr.bf16.mxu1 %v1326_v58 }
 0x1f9   : > { %v1307_v4 = vmul.f32 %v1265_v60, %v948_v59  ;;  %v952_v5 = vadd.f32 %v951_v1, %v2671_v43  ;;  %v1269_v6 = vadd.f32 %v1268_v2, %v2674_v44  ;;  %v953_v7 = vpop.f32.mrb[27].mxu1  ;;  %v1270_v8 = vpop.f32.mrb[59].mxu0  ;;  %1532 = vmatmul.mubr.bf16.gmra.mrb[40].mxu1 %v1325_v56 }
 0x1fa   : > { %v1308_v9 = vmul.f32 %v1267_v0, %v950_v63  ;;  %v954_v10 = vadd.f32 %v953_v7, %v2677_v45  ;;  %v1271_v11 = vadd.f32 %v1270_v8, %v2680_v46 }
 0x1fb   : > { %v1309_v12 = vmul.f32 %v1269_v6, %v952_v5 }
 0x1fc   : > { %v1310_v13 = vmul.f32 %v1271_v11, %v954_v10  ;;  %v1652_v11 = vld [vmem:[%s2750_s15] sm:$0xff] }
 0x1fd   : > { %v1327_v14 = vpack.c.bf16 %v1309_v12, %v1307_v4 }
 0x1fe   : > { %v957_v15 = vpop.f32.mrb[28].mxu1  ;;  %v1274_v16 = vpop.f32.mrb[60].mxu0  ;;  %v1328_v17 = vpack.c.bf16 %v1310_v13, %v1308_v9 }
 0x1ff   : > { %v958_v18 = vadd.f32 %v957_v15, %v2671_v43  ;;  %v1275_v19 = vadd.f32 %v1274_v16, %v2674_v44  ;;  %v959_v20 = vpop.f32.mrb[29].mxu1  ;;  %v1276_v3 = vpop.f32.mrb[61].mxu0  ;;  %v2756_v15 = vld [vmem:[%s2855_s9] ss:$0 sm:$0xff]  ;;  %v1653_v16 = vld [vmem:[%s2750_s15 + $0x8] sm:$0xff] }
 0x200   : > { %v960_v21 = vadd.f32 %v959_v20, %v2677_v45  ;;  %v1277_v22 = vadd.f32 %v1276_v3, %v2680_v46  ;;  %v961_v23 = vpop.f32.mrb[30].mxu1  ;;  %v1278_v24 = vpop.f32.mrb[62].mxu0  ;;  %1539 = vmatprep.mubr.bf16.mxu1 %v1328_v17 }
 0x201   : > { %v1311_v25 = vmul.f32 %v1275_v19, %v958_v18  ;;  %v962_v26 = vadd.f32 %v961_v23, %v2671_v43  ;;  %v1279_v27 = vadd.f32 %v1278_v24, %v2674_v44  ;;  %v963_v28 = vpop.f32.mrb[31].mxu1  ;;  %v1280_v29 = vpop.f32.mrb[63].mxu0  ;;  %1540 = vmatmul.mubr.bf16.gmra.mrb[44].mxu1 %v1327_v14 }
 0x202   : > { %v1312_v30 = vmul.f32 %v1277_v22, %v960_v21  ;;  %v964_v32 = vadd.f32 %v963_v28, %v2677_v45  ;;  %v1281_v36 = vadd.f32 %v1280_v29, %v2680_v46 }
 0x203   : > { %v1313_v37 = vmul.f32 %v1279_v27, %v962_v26 }
 0x204   : > { %v1314_v38 = vmul.f32 %v1281_v36, %v964_v32  ;;  %v1654_v36 = vld [vmem:[%s2750_s15 + $0x10] sm:$0xff] }
 0x205   : > { %v1329_v34 = vpack.c.bf16 %v1313_v37, %v1311_v25 }
 0x206   : > { %v1330_v35 = vpack.c.bf16 %v1314_v38, %v1312_v30 }
 0x208   : > { %1547 = vmatprep.mubr.bf16.mxu1 %v1330_v35  ;;  %v1655_v35 = vld [vmem:[%s2750_s15 + $0x18] sm:$0xff] }
 0x209   : > { %1548 = vmatmul.mubr.bf16.gmra.mrb[48].mxu1 %v1329_v34 }
 0x2a4   : > { %v2001_v39 = vpop.f32.mrb[64].mxu0 }
 0x2a5   : > { %v2002_v40 = vpop.f32.mrb[65].mxu0 }
 0x2a6   : > { %v2003_v41 = vadd.f32 %v2002_v40, %v2001_v39  ;;  %v2004_v43 = vpop.f32.mrb[66].mxu0 }
 0x2a7   : > { %v2005_v42 = vpop.f32.mrb[67].mxu0 }
 0x2a8   : > { %v1965_v44 = vmul.f32 -1.442695, %v2003_v41  ;;  %v2006_v47 = vadd.f32 %v2005_v42, %v2004_v43 }
 0x2aa   : > { %2189 = vpow2.f32 %v1965_v44  ;;  %v1966_v48 = vmul.f32 -1.442695, %v2006_v47 }
 0x2ac   : > { %2191 = vpow2.f32 %v1966_v48  ;;  %v2007_v49 = vpop.f32.mrb[68].mxu0 }
 0x2ad   : > { %v2008_v45 = vpop.f32.mrb[69].mxu0 }
 0x2ae   : > { %v2009_v50 = vadd.f32 %v2008_v45, %v2007_v49  ;;  %v2010_v46 = vpop.f32.mrb[70].mxu0 }
 0x2af   : > { %v2011_v51 = vpop.f32.mrb[71].mxu0 }
 0x2b0   : > { %v1967_v52 = vmul.f32 -1.442695, %v2009_v50  ;;  %v2012_v53 = vadd.f32 %v2011_v51, %v2010_v46 }
 0x2b2   : > { %2193 = vpow2.f32 %v1967_v52  ;;  %v1968_v54 = vmul.f32 -1.442695, %v2012_v53 }
 0x2b4   : > { %v2190_v31 = vpop.eup %2189  ;;  %2195 = vpow2.f32 %v1968_v54  ;;  %v2013_v55 = vpop.f32.mrb[72].mxu0 }
 0x2b5   : > { %v1604_v56 = vadd.f32 1.0, %v2190_v31  ;;  %v2014_v57 = vpop.f32.mrb[73].mxu0 }
 0x2b6   : > { %v2192_v33 = vpop.eup %2191  ;;  %v2015_v58 = vadd.f32 %v2014_v57, %v2013_v55  ;;  %v2016_v59 = vpop.f32.mrb[74].mxu0  ;;  %v1656_v55 = vld [vmem:[%s2750_s15 + $0x20] sm:$0xff] }
 0x2b7   : > { %2197 = vrcp.f32 %v1604_v56  ;;  %v1605_v60 = vadd.f32 1.0, %v2192_v33  ;;  %v2017_v61 = vpop.f32.mrb[75].mxu0 }
 0x2b8   : > { %v1969_v62 = vmul.f32 -1.442695, %v2015_v58  ;;  %v2018_v63 = vadd.f32 %v2017_v61, %v2016_v59  ;;  %v1657_v58 = vld [vmem:[%s2750_s15 + $0x28] sm:$0xff] }
 0x2b9   : > { %2199 = vrcp.f32 %v1605_v60 }
 0x2ba   : > { %2201 = vpow2.f32 %v1969_v62  ;;  %v1970_v0 = vmul.f32 -1.442695, %v2018_v63 }
 0x2bc   : > { %v2194_v1 = vpop.eup %2193  ;;  %2203 = vpow2.f32 %v1970_v0  ;;  %v2019_v2 = vpop.f32.mrb[32].mxu1 }
 0x2bd   : > { %v1606_v4 = vadd.f32 1.0, %v2194_v1  ;;  %v2020_v5 = vpop.f32.mrb[33].mxu1 }
 0x2be   : > { %v2196_v6 = vpop.eup %2195  ;;  %v2021_v7 = vadd.f32 %v2020_v5, %v2019_v2  ;;  %v2022_v8 = vpop.f32.mrb[34].mxu1 }
 0x2bf   : > { %2205 = vrcp.f32 %v1606_v4  ;;  %v1607_v9 = vadd.f32 1.0, %v2196_v6  ;;  %v2023_v10 = vpop.f32.mrb[35].mxu1 }
 0x2c0   : > { %v1971_v12 = vmul.f32 -1.442695, %v2021_v7  ;;  %v2024_v13 = vadd.f32 %v2023_v10, %v2022_v8 }
 0x2c1   : > { %v2198_v14 = vpop.eup %2197  ;;  %2207 = vrcp.f32 %v1607_v9 }
 0x2c2   : > { %2209 = vpow2.f32 %v1971_v12  ;;  %v1972_v17 = vmul.f32 -1.442695, %v2024_v13  ;;  %v1668_v18 = vmul.f32 %v2198_v14, %v1652_v11  ;;  %v1658_v13 = vld [vmem:[%s2750_s15 + $0x30] sm:$0xff] }
 0x2c3   : > { %v2200_v19 = vpop.eup %2199 }
 0x2c4   : > { %v2202_v20 = vpop.eup %2201  ;;  %2211 = vpow2.f32 %v1972_v17  ;;  %v2025_v3 = vpop.f32.mrb[36].mxu1  ;;  %v1691_v21 = vmul.f32 %v2756_v15, %v1668_v18  ;;  %v1669_v22 = vmul.f32 %v2200_v19, %v1653_v16  ;;  %v1659_v19 = vld [vmem:[%s2750_s15 + $0x38] sm:$0xff] }
 0x2c5   : > { %v1608_v23 = vadd.f32 1.0, %v2202_v20  ;;  %v2026_v24 = vpop.f32.mrb[37].mxu1 }
 0x2c6   : > { %v2204_v25 = vpop.eup %2203  ;;  %v2027_v26 = vadd.f32 %v2026_v24, %v2025_v3  ;;  %v2028_v27 = vpop.f32.mrb[38].mxu1  ;;  %v1708_v28 = vsel %vm1707_vm1, %v1691_v21, 0.0  ;;  %v1692_v29 = vmul.f32 %v2756_v15, %v1669_v22 }
 0x2c7   : > { %2213 = vrcp.f32 %v1608_v23  ;;  %v1609_v30 = vadd.f32 1.0, %v2204_v25  ;;  %v2029_v32 = vpop.f32.mrb[39].mxu1  ;;  %1709 = vadd.xlane.f32.xlu0 %v1708_v28 }
 0x2c8   : > { %v1973_v37 = vmul.f32 -1.442695, %v2027_v26  ;;  %v2030_v38 = vadd.f32 %v2029_v32, %v2028_v27  ;;  %v1711_v40 = vsel %vm1707_vm1, %v1692_v29, 0.0 }
 0x2c9   : > { %v2206_v34 = vpop.eup %2205  ;;  %2215 = vrcp.f32 %v1609_v30 }
 0x2ca   : > { %2217 = vpow2.f32 %v1973_v37  ;;  %v1974_v39 = vmul.f32 -1.442695, %v2030_v38  ;;  %v1670_v41 = vmul.f32 %v2206_v34, %v1654_v36  ;;  %v1660_v34 = vld [vmem:[%s2750_s15 + $0x40] sm:$0xff] }
 0x2cb   : > { %v2208_v43 = vpop.eup %2207  ;;  %1712 = vadd.xlane.f32.xlu0 %v1711_v40 }
 0x2cc   : > { %v2210_v42 = vpop.eup %2209  ;;  %2219 = vpow2.f32 %v1974_v39  ;;  %v2031_v44 = vpop.f32.mrb[40].mxu1  ;;  %v1693_v47 = vmul.f32 %v2756_v15, %v1670_v41  ;;  %v1671_v48 = vmul.f32 %v2208_v43, %v1655_v35  ;;  %v1661_v43 = vld [vmem:[%s2750_s15 + $0x48] sm:$0xff] }
 0x2cd   : > { %v1610_v49 = vadd.f32 1.0, %v2210_v42  ;;  %v2032_v45 = vpop.f32.mrb[41].mxu1 }
 0x2ce   : > { %v2212_v50 = vpop.eup %2211  ;;  %v2033_v46 = vadd.f32 %v2032_v45, %v2031_v44  ;;  %v2034_v51 = vpop.f32.mrb[42].mxu1  ;;  %v1714_v52 = vsel %vm1707_vm1, %v1693_v47, 0.0  ;;  %v1694_v53 = vmul.f32 %v2756_v15, %v1671_v48 }
 0x2cf   : > { %2221 = vrcp.f32 %v1610_v49  ;;  %v1611_v54 = vadd.f32 1.0, %v2212_v50  ;;  %v2035_v31 = vpop.f32.mrb[43].mxu1  ;;  %1715 = vadd.xlane.f32.xlu1 %v1714_v52 }
 0x2d0   : > { %v1975_v56 = vmul.f32 -1.442695, %v2033_v46  ;;  %v2036_v57 = vadd.f32 %v2035_v31, %v2034_v51  ;;  %v1717_v60 = vsel %vm1707_vm1, %v1694_v53, 0.0 }
 0x2d1   : > { %v2214_v33 = vpop.eup %2213  ;;  %2223 = vrcp.f32 %v1611_v54  ;;  %v1662_v54 = vld [vmem:[%s2750_s15 + $0x50] sm:$0xff] }
 0x2d2   : > { %2225 = vpow2.f32 %v1975_v56  ;;  %v1976_v59 = vmul.f32 -1.442695, %v2036_v57  ;;  %v1672_v61 = vmul.f32 %v2214_v33, %v1656_v55  ;;  %v1663_v56 = vld [vmem:[%s2750_s15 + $0x58] sm:$0xff] }
 0x2d3   : > { %v2216_v62 = vpop.eup %2215  ;;  %1718 = vadd.xlane.f32.xlu1 %v1717_v60 }
 0x2d4   : > { %v2218_v63 = vpop.eup %2217  ;;  %2227 = vpow2.f32 %v1976_v59  ;;  %v2037_v0 = vpop.f32.mrb[44].mxu1  ;;  %v1695_v1 = vmul.f32 %v2756_v15, %v1672_v61  ;;  %v1673_v2 = vmul.f32 %v2216_v62, %v1657_v58 }
 0x2d5   : > { %v1612_v4 = vadd.f32 1.0, %v2218_v63  ;;  %v2038_v5 = vpop.f32.mrb[45].mxu1 }
 0x2d6   : > { %v2220_v6 = vpop.eup %2219  ;;  %v2039_v7 = vadd.f32 %v2038_v5, %v2037_v0  ;;  %v2040_v8 = vpop.f32.mrb[46].mxu1  ;;  %v1720_v9 = vsel %vm1707_vm1, %v1695_v1, 0.0  ;;  %v1696_v10 = vmul.f32 %v2756_v15, %v1673_v2  ;;  %v1664_v2 = vld [vmem:[%s2750_s15 + $0x60] sm:$0xff] }
 0x2d7   : > { %2229 = vrcp.f32 %v1612_v4  ;;  %v1613_v11 = vadd.f32 1.0, %v2220_v6  ;;  %v2041_v12 = vpop.f32.mrb[47].mxu1  ;;  %1721 = vadd.xlane.f32.xlu0 %v1720_v9  ;;  %v1665_v6 = vld [vmem:[%s2750_s15 + $0x68] sm:$0xff] }
 0x2d8   : > { %v1977_v14 = vmul.f32 -1.442695, %v2039_v7  ;;  %v2042_v16 = vadd.f32 %v2041_v12, %v2040_v8  ;;  %v1723_v17 = vsel %vm1707_vm1, %v1696_v10, 0.0 }
 0x2d9   : > { %v2222_v18 = vpop.eup %2221  ;;  %2231 = vrcp.f32 %v1613_v11  ;;  %1724 = vadd.xlane.f32.xlu1 %v1723_v17  ;;  %v1667_v17 = vld [vmem:[%s2750_s15 + $0x78] sm:$0xff] }
 0x2da   : > { %2233 = vpow2.f32 %v1977_v14  ;;  %v1978_v20 = vmul.f32 -1.442695, %v2042_v16  ;;  %v1674_v3 = vmul.f32 %v2222_v18, %v1658_v13  ;;  %v1666_v13 = vld [vmem:[%s2750_s15 + $0x70] sm:$0xff] }
 0x2db   : > { %v2224_v21 = vpop.eup %2223 }
 0x2dc   : > { %v2226_v22 = vpop.eup %2225  ;;  %2235 = vpow2.f32 %v1978_v20  ;;  %v2043_v23 = vpop.f32.mrb[48].mxu1  ;;  %v1697_v24 = vmul.f32 %v2756_v15, %v1674_v3  ;;  %v1675_v25 = vmul.f32 %v2224_v21, %v1659_v19 }
 0x2dd   : > { %v1614_v26 = vadd.f32 1.0, %v2226_v22  ;;  %v2044_v27 = vpop.f32.mrb[49].mxu1 }
 0x2de   : > { %v2228_v28 = vpop.eup %2227  ;;  %v2045_v29 = vadd.f32 %v2044_v27, %v2043_v23  ;;  %v2046_v30 = vpop.f32.mrb[50].mxu1  ;;  %v1726_v32 = vsel %vm1707_vm1, %v1697_v24, 0.0  ;;  %v1698_v36 = vmul.f32 %v2756_v15, %v1675_v25  ;;  %v1982_v24 = vld [vmem:[#allocation2] ss:$0 sm:$0xff] }
 0x2df   : > { %2237 = vrcp.f32 %v1614_v26  ;;  %v1615_v37 = vadd.f32 1.0, %v2228_v28  ;;  %v2047_v38 = vpop.f32.mrb[51].mxu1  ;;  %1727 = vadd.xlane.f32.xlu0 %v1726_v32 }
 0x2e0   : > { %v1979_v35 = vmul.f32 -1.442695, %v2045_v29  ;;  %v2048_v39 = vadd.f32 %v2047_v38, %v2046_v30  ;;  %v1729_v40 = vsel %vm1707_vm1, %v1698_v36, 0.0 }
 0x2e1   : > { %v2230_v41 = vpop.eup %2229  ;;  %2239 = vrcp.f32 %v1615_v37  ;;  %1730 = vadd.xlane.f32.xlu1 %v1729_v40 }
 0x2e2   : > { %2241 = vpow2.f32 %v1979_v35  ;;  %v1980_v42 = vmul.f32 -1.442695, %v2048_v39  ;;  %v1676_v44 = vmul.f32 %v2230_v41, %v1660_v34 }
 0x2e3   : > { %v2232_v47 = vpop.eup %2231 }
 0x2e4   : > { %v2234_v48 = vpop.eup %2233  ;;  %2243 = vpow2.f32 %v1980_v42  ;;  %v1699_v49 = vmul.f32 %v2756_v15, %v1676_v44  ;;  %v1677_v45 = vmul.f32 %v2232_v47, %v1661_v43 }
 0x2e5   : > { %v1616_v50 = vadd.f32 1.0, %v2234_v48 }
 0x2e6   : > { %v2236_v46 = vpop.eup %2235  ;;  %v1732_v51 = vsel %vm1707_vm1, %v1699_v49, 0.0  ;;  %v1700_v52 = vmul.f32 %v2756_v15, %v1677_v45 }
 0x2e7   : > { %2245 = vrcp.f32 %v1616_v50  ;;  %v1617_v53 = vadd.f32 1.0, %v2236_v46  ;;  %1733 = vadd.xlane.f32.xlu0 %v1732_v51 }
 0x2e8   : > { %v1735_v31 = vsel %vm1707_vm1, %v1700_v52, 0.0 }
 0x2e9   : > { %v2238_v55 = vpop.eup %2237  ;;  %2247 = vrcp.f32 %v1617_v53  ;;  %1736 = vadd.xlane.f32.xlu1 %v1735_v31 }
 0x2ea   : > { %v1678_v57 = vmul.f32 %v2238_v55, %v1662_v54 }
 0x2eb   : > { %v2240_v33 = vpop.eup %2239 }
 0x2ec   : > { %v2242_v58 = vpop.eup %2241  ;;  %v1701_v59 = vmul.f32 %v2756_v15, %v1678_v57  ;;  %v1679_v60 = vmul.f32 %v2240_v33, %v1663_v56 }
 0x2ed   : > { %v1618_v61 = vadd.f32 1.0, %v2242_v58 }
 0x2ee   : > { %v2244_v62 = vpop.eup %2243  ;;  %v1738_v63 = vsel %vm1707_vm1, %v1701_v59, 0.0  ;;  %v1702_v0 = vmul.f32 %v2756_v15, %v1679_v60 }
 0x2ef   : > { %2249 = vrcp.f32 %v1618_v61  ;;  %v1619_v1 = vadd.f32 1.0, %v2244_v62  ;;  %1739 = vadd.xlane.f32.xlu0 %v1738_v63 }
 0x2f0   : > { %v1741_v4 = vsel %vm1707_vm1, %v1702_v0, 0.0 }
 0x2f1   : > { %v2246_v5 = vpop.eup %2245  ;;  %2251 = vrcp.f32 %v1619_v1  ;;  %1742 = vadd.xlane.f32.xlu1 %v1741_v4 }
 0x2f2   : > { %v1680_v7 = vmul.f32 %v2246_v5, %v1664_v2 }
 0x2f3   : > { %v2248_v8 = vpop.eup %2247 }
 0x2f4   : > { %v1703_v9 = vmul.f32 %v2756_v15, %v1680_v7  ;;  %v1681_v10 = vmul.f32 %v2248_v8, %v1665_v6 }
 0x2f6   : > { %v1744_v11 = vsel %vm1707_vm1, %v1703_v9, 0.0  ;;  %v1704_v12 = vmul.f32 %v2756_v15, %v1681_v10 }
 0x2f7   : > { %1745 = vadd.xlane.f32.xlu0 %v1744_v11 }
 0x2f8   : > { %v1747_v14 = vsel %vm1707_vm1, %v1704_v12, 0.0 }
 0x2f9   : > { %v2250_v16 = vpop.eup %2249  ;;  %1748 = vadd.xlane.f32.xlu1 %v1747_v14 }
 0x2fa   : > { %v1682_v18 = vmul.f32 %v2250_v16, %v1666_v13 }
 0x2fb   : > { %v2252_v19 = vpop.eup %2251 }
 0x2fc   : > { %v1705_v20 = vmul.f32 %v2756_v15, %v1682_v18  ;;  %v1683_v3 = vmul.f32 %v2252_v19, %v1667_v17 }
 0x2fe   : > { %v1750_v21 = vsel %vm1707_vm1, %v1705_v20, 0.0  ;;  %v1706_v22 = vmul.f32 %v2756_v15, %v1683_v3 }
 0x2ff   : > { %1751 = vadd.xlane.f32.xlu0 %v1750_v21 }
 0x300   : > { %v1753_v23 = vsel %vm1707_vm1, %v1706_v22, 0.0 }
 0x301   : > { %1754 = vadd.xlane.f32.xlu1 %v1753_v23 }
 0x354   : > { %v1710_v25 = vpop.xlane.xlu0 %1709 }
 0x355   : > { %v1763_v26 = vadd.f32 %v1982_v24, %v1710_v25 }
 0x357   : > { %1780 = vst.msk [vmem:[%s2809_s26] sm:$0xff] %vm1779_vm2, %v1763_v26 }
 0x358   : > { %v1713_v15 = vpop.xlane.xlu0 %1712 }
 0x359   : > { %v1764_v27 = vadd.f32 %v1982_v24, %v1713_v15 }
 0x35b   : > { %1781 = vst.msk [vmem:[%s2809_s26 + $0x8] sm:$0xff] %vm1779_vm2, %v1764_v27 }
 0x35c   : > { %v1716_v28 = vpop.xlane.xlu1 %1715 }
 0x35d   : > { %v1765_v29 = vadd.f32 %v1982_v24, %v1716_v28 }
 0x35f   : > { %1782 = vst.msk [vmem:[%s2809_s26 + $0x10] sm:$0xff] %vm1779_vm2, %v1765_v29 }
 0x360   : > { %v1719_v30 = vpop.xlane.xlu1 %1718 }
 0x361   : > { %v1766_v32 = vadd.f32 %v1982_v24, %v1719_v30 }
 0x363   : > { %1783 = vst.msk [vmem:[%s2809_s26 + $0x18] sm:$0xff] %vm1779_vm2, %v1766_v32 }
 0x364   : > { %v1722_v36 = vpop.xlane.xlu0 %1721 }
 0x365   : > { %v1767_v37 = vadd.f32 %v1982_v24, %v1722_v36 }
 0x366   : > { %v1725_v38 = vpop.xlane.xlu1 %1724 }
 0x367   : > { %1784 = vst.msk [vmem:[%s2809_s26 + $0x20] sm:$0xff] %vm1779_vm2, %v1767_v37  ;;  %v1768_v34 = vadd.f32 %v1982_v24, %v1725_v38 }
 0x369   : > { %1785 = vst.msk [vmem:[%s2809_s26 + $0x28] sm:$0xff] %vm1779_vm2, %v1768_v34 }
 0x36c   : > { %v1728_v35 = vpop.xlane.xlu0 %1727 }
 0x36d   : > { %v1769_v39 = vadd.f32 %v1982_v24, %v1728_v35 }
 0x36e   : > { %v1731_v40 = vpop.xlane.xlu1 %1730 }
 0x36f   : > { %1786 = vst.msk [vmem:[%s2809_s26 + $0x30] sm:$0xff] %vm1779_vm2, %v1769_v39  ;;  %v1770_v41 = vadd.f32 %v1982_v24, %v1731_v40 }
 0x371   : > { %1787 = vst.msk [vmem:[%s2809_s26 + $0x38] sm:$0xff] %vm1779_vm2, %v1770_v41 }
 0x374   : > { %v1734_v43 = vpop.xlane.xlu0 %1733 }
 0x375   : > { %v1771_v42 = vadd.f32 %v1982_v24, %v1734_v43 }
 0x376   : > { %v1737_v44 = vpop.xlane.xlu1 %1736 }
 0x377   : > { %1788 = vst.msk [vmem:[%s2809_s26 + $0x40] sm:$0xff] %vm1779_vm2, %v1771_v42  ;;  %v1772_v47 = vadd.f32 %v1982_v24, %v1737_v44 }
 0x379   : > { %1789 = vst.msk [vmem:[%s2809_s26 + $0x48] sm:$0xff] %vm1779_vm2, %v1772_v47 }
 0x37c   : > { %v1740_v48 = vpop.xlane.xlu0 %1739 }
 0x37d   : > { %v1773_v49 = vadd.f32 %v1982_v24, %v1740_v48 }
 0x37e   : > { %v1743_v45 = vpop.xlane.xlu1 %1742 }
 0x37f   : > { %1790 = vst.msk [vmem:[%s2809_s26 + $0x50] sm:$0xff] %vm1779_vm2, %v1773_v49  ;;  %v1774_v50 = vadd.f32 %v1982_v24, %v1743_v45 }
 0x381   : > { %1791 = vst.msk [vmem:[%s2809_s26 + $0x58] sm:$0xff] %vm1779_vm2, %v1774_v50 }
 0x384   : > { %v1746_v46 = vpop.xlane.xlu0 %1745 }
 0x385   : > { %v1775_v51 = vadd.f32 %v1982_v24, %v1746_v46 }
 0x386   : > { %v1749_v52 = vpop.xlane.xlu1 %1748 }
 0x387   : > { %1792 = vst.msk [vmem:[%s2809_s26 + $0x60] sm:$0xff] %vm1779_vm2, %v1775_v51  ;;  %v1776_v53 = vadd.f32 %v1982_v24, %v1749_v52 }
 0x389   : > { %1793 = vst.msk [vmem:[%s2809_s26 + $0x68] sm:$0xff] %vm1779_vm2, %v1776_v53 }
 0x38c   : > { %v1752_v54 = vpop.xlane.xlu0 %1751 }
 0x38d   : > { %v1777_v31 = vadd.f32 %v1982_v24, %v1752_v54 }
 0x38e   : > { %v1755_v55 = vpop.xlane.xlu1 %1754 }
 0x38f   : > { %1794 = vst.msk [vmem:[%s2809_s26 + $0x70] sm:$0xff] %vm1779_vm2, %v1777_v31  ;;  %v1778_v56 = vadd.f32 %v1982_v24, %v1755_v55 }
 0x391   : > { %1795 = vst.msk [vmem:[%s2809_s26 + $0x78] sm:$0xff] %vm1779_vm2, %v1778_v56 }
 0x392 PF: > { %s23_s19 = sadd.s32 1, %s2259_s19  }
 0x393   : > { %p20_p4 = scmp.ge.s32.totalorder %s23_s19, 4  }
 0x395   :  { %22 = sbr.rel (!%p20_p4) target bundleno = 3 (0x3), region = 97 }

</bundles_post_ra>
